<compile_context>
chip_gen: v6e
topology: v6e:2x2x1
jax: 0.10.0
libtpu: 0.0.40
codegen_flags: <defaults>
</compile_context>

<pallas_src>
import functools

import numpy as np
import jax
import jax.numpy as jnp
from jax.experimental import pallas as pl
from jax.experimental.pallas import tpu as pltpu

BN_EPS = 1e-5


# ---------------------------------------------------------------------------
# In-kernel helpers (operate on loaded values and VMEM scratch refs)
# ---------------------------------------------------------------------------
def _assemble_stride1_slab(x, n, L, K, pad, slab_ref):
    """im2col for a stride-1 'same' conv with the batch folded into rows.

    x: (n*L, Cin) value (batch-major rows).  Fills slab_ref (n*Lout, K*Cin) so
    slab[nb*Lout + i, k*Cin + c] == x_nb[i + k - pad, c], zero outside [0, L).
    n and K are small compile-time constants, so the loops unroll statically.
    """
    Cin = x.shape[1]
    Lout = L + 2 * pad - K + 1
    slab_ref[...] = jnp.zeros(slab_ref.shape, jnp.float32)   # zero-fills the halo taps
    for nb in range(n):
        for k in range(K):
            i0 = max(0, pad - k)
            i1 = min(Lout, L + pad - k)
            if i1 <= i0:
                continue
            slab_ref[nb * Lout + i0:nb * Lout + i1, k * Cin:(k + 1) * Cin] = (
                x[nb * L + i0 + k - pad:nb * L + i1 + k - pad, :])


def _even_odd_rows(x):
    """Rows 0,2,4,... and 1,3,5,... of x, via 0/1 selection matmuls on the MXU.

    Replaces strided sublane loads/shuffles; with an even per-batch length the
    global even/odd rows of the batch-stacked array are the per-batch ones.
    """
    M = x.shape[0]
    H = M // 2
    r = jax.lax.broadcasted_iota(jnp.int32, (H, M), 0)
    c = jax.lax.broadcasted_iota(jnp.int32, (H, M), 1)
    even = jnp.dot((c == 2 * r).astype(jnp.float32), x,
                   preferred_element_type=jnp.float32)
    odd = jnp.dot((c == 2 * r + 1).astype(jnp.float32), x,
                  preferred_element_type=jnp.float32)
    return even, odd


def _fused_forward_kernel(x_ref, w1_ref, b1_ref,
                          w11_ref, s11_ref, w12_ref, s12_ref,
                          w21_ref, s21_ref, wsc_ref, ssc_ref,
                          w22_ref, s22_ref, fcw_ref, fcb_ref,
                          out_ref,
                          slab1_ref, slab2_ref, slab3_ref, slab4_ref,
                          *, n, L):
    f32 = jnp.float32
    x = x_ref[...]                                                     # (n*L, 4)

    # ---- conv1: k=7, pad=3, stride=1, +bias, Sigmoid ----------------------
    _assemble_stride1_slab(x, n, L, 7, 3, slab1_ref)
    h0 = jax.nn.sigmoid(jnp.dot(slab1_ref[...], w1_ref[...],
                                preferred_element_type=f32) + b1_ref[...])  # (n*L, 64)

    # ---- layer1: BasicBlock1D(64 -> 64, stride=1), identity shortcut ------
    _assemble_stride1_slab(h0, n, L, 3, 1, slab2_ref)
    t = jnp.maximum(jnp.dot(slab2_ref[...], w11_ref[...],
                            preferred_element_type=f32) + s11_ref[...], 0.0)
    _assemble_stride1_slab(t, n, L, 3, 1, slab2_ref)
    h1 = jnp.maximum(jnp.dot(slab2_ref[...], w12_ref[...],
                             preferred_element_type=f32) + s12_ref[...] + h0, 0.0)

    # ---- layer2: BasicBlock1D(64 -> 128, stride=2), conv1x1+BN shortcut ---
    L2 = L // 2
    C = h1.shape[1]
    even, odd = _even_odd_rows(h1)            # (n*L2, 64): per-batch rows 2i / 2i+1
    # stride-2, k=3, pad=1 im2col: tap0 <- row 2i-1, tap1 <- 2i, tap2 <- 2i+1
    slab3_ref[...] = jnp.zeros(slab3_ref.shape, f32)
    slab3_ref[:, C:2 * C] = even
    slab3_ref[:, 2 * C:3 * C] = odd
    for nb in range(n):   # shift odd rows down by one inside each batch (i=0 -> pad zero)
        slab3_ref[nb * L2 + 1:(nb + 1) * L2, 0:C] = odd[nb * L2:(nb + 1) * L2 - 1, :]
    t2 = jnp.maximum(jnp.dot(slab3_ref[...], w21_ref[...],
                             preferred_element_type=f32) + s21_ref[...], 0.0)  # (n*L2,128)
    sc = jnp.dot(even, wsc_ref[...], preferred_element_type=f32) + ssc_ref[...]
    _assemble_stride1_slab(t2, n, L2, 3, 1, slab4_ref)
    h2 = jnp.maximum(jnp.dot(slab4_ref[...], w22_ref[...],
                             preferred_element_type=f32) + s22_ref[...] + sc, 0.0)

    # ---- AdaptiveAvgPool1d(1) + flatten + Linear (one store for the batch) -
    M = n * L2
    rr = jax.lax.broadcasted_iota(jnp.int32, (n, M), 0)
    cc = jax.lax.broadcasted_iota(jnp.int32, (n, M), 1)
    pool = jnp.where((cc >= rr * L2) & (cc < (rr + 1) * L2), 1.0 / L2, 0.0).astype(f32)
    pooled = jnp.dot(pool, h2, preferred_element_type=f32)              # (n, 128)
    out_ref[...] = (jnp.dot(pooled, fcw_ref[...], preferred_element_type=f32)
                    + fcb_ref[...]).astype(out_ref.dtype)


# ---------------------------------------------------------------------------
# Wrapper: fold BN into weights and launch the single fused kernel
# ---------------------------------------------------------------------------
def _fold_bn(w_kio, bn):
    """Fold eval-mode BN into the conv weight.  w_kio: (K, Cin, Cout).

    Returns (w2d, shift): w2d is (K*Cin, Cout) with the per-output-channel BN
    scale pre-multiplied; shift is (1, Cout), added after the matmul.
    """
    scale = bn["gamma"] / jnp.sqrt(bn["var"] + BN_EPS)
    shift = bn["beta"] - bn["mean"] * scale
    K, Cin, Cout = w_kio.shape
    w2d = (w_kio * scale).reshape(K * Cin, Cout).astype(jnp.float32)
    return w2d, shift.reshape(1, Cout).astype(jnp.float32)


@jax.jit
def signal_predictor_forward(x_ncl, params):
    """x_ncl: (N, 4, L) float32 in PyTorch NCL layout. Returns (N, num_classes)."""
    N, Cin, L = x_ncl.shape
    assert L % 2 == 0, "stride-2 block assumes an even signal length"
    L2 = L // 2

    # channels-last, batch folded into the matmul M dimension: (N*L, Cin)
    x2d = jnp.transpose(x_ncl, (0, 2, 1)).astype(jnp.float32).reshape(N * L, Cin)

    w1 = params["conv1_w"].reshape(-1, params["conv1_w"].shape[-1]).astype(jnp.float32)
    b1 = params["conv1_b"].reshape(1, -1).astype(jnp.float32)
    w11, s11 = _fold_bn(params["b1_w1"], params["b1_bn1"])
    w12, s12 = _fold_bn(params["b1_w2"], params["b1_bn2"])
    w21, s21 = _fold_bn(params["b2_w1"], params["b2_bn1"])
    wsc, ssc = _fold_bn(params["b2_wsc"], params["b2_bnsc"])
    w22, s22 = _fold_bn(params["b2_w2"], params["b2_bn2"])
    fcw = params["fc_w"].astype(jnp.float32)                 # (128, num_classes)
    fcb = params["fc_b"].reshape(1, -1).astype(jnp.float32)
    num_classes = fcw.shape[1]

    args = [x2d, w1, b1, w11, s11, w12, s12, w21, s21, wsc, ssc, w22, s22, fcw, fcb]
    in_specs = [pl.BlockSpec(a.shape, lambda i: (0, 0)) for a in args]

    return pl.pallas_call(
        functools.partial(_fused_forward_kernel, n=N, L=L),
        out_shape=jax.ShapeDtypeStruct((N, num_classes), jnp.float32),
        grid=(1,),
        in_specs=in_specs,
        out_specs=pl.BlockSpec((N, num_classes), lambda i: (0, 0)),
        scratch_shapes=[
            pltpu.VMEM((N * L, w1.shape[0]), jnp.float32),    # conv1 im2col slab
            pltpu.VMEM((N * L, w11.shape[0]), jnp.float32),   # layer1 conv slabs (reused)
            pltpu.VMEM((N * L2, w21.shape[0]), jnp.float32),  # layer2 stride-2 conv slab
            pltpu.VMEM((N * L2, w22.shape[0]), jnp.float32),  # layer2 conv2 slab
        ],
        compiler_params=pltpu.CompilerParams(
            dimension_semantics=("arbitrary",)),
    )(*args)


# ---------------------------------------------------------------------------
# Parameters
# ---------------------------------------------------------------------------
def init_params(key, num_classes):
    ks = jax.random.split(key, 8)

    def nrm(k, shape):
        return 0.1 * jax.random.normal(k, shape, jnp.float32)

    def bn(c):  # eval-mode BatchNorm1d state (PyTorch defaults)
        return {"gamma": jnp.ones((c,), jnp.float32), "beta": jnp.zeros((c,), jnp.float32),
                "mean": jnp.zeros((c,), jnp.float32), "var": jnp.ones((c,), jnp.float32)}

    return {
        # conv weights stored as (K, Cin, Cout)  (PyTorch Conv1d is (Cout, Cin, K))
        "conv1_w": nrm(ks[0], (7, 4, 64)), "conv1_b": nrm(ks[1], (64,)),
        "b1_w1": nrm(ks[2], (3, 64, 64)), "b1_bn1": bn(64),
        "b1_w2": nrm(ks[3], (3, 64, 64)), "b1_bn2": bn(64),
        "b2_w1": nrm(ks[4], (3, 64, 128)), "b2_bn1": bn(128),
        "b2_w2": nrm(ks[5], (3, 128, 128)), "b2_bn2": bn(128),
        "b2_wsc": nrm(ks[6], (1, 64, 128)), "b2_bnsc": bn(128),
        # fc weight stored as (in=128, out=num_classes): transpose of PyTorch Linear.weight
        "fc_w": nrm(ks[7], (128, num_classes)),
        "fc_b": jnp.zeros((num_classes,), jnp.float32),
    }


# ---------------------------------------------------------------------------
# Pure NumPy reference (independent NCL implementation) for a sanity check
# ---------------------------------------------------------------------------
def _ref_forward(x_ncl, params):
    x = np.asarray(x_ncl, np.float64)

    def conv1d(xin, w_kio, bias, stride, pad):
        N, Cin, L = xin.shape
        K, _, Cout = np.asarray(w_kio).shape
        Lout = (L + 2 * pad - K) // stride + 1
        xp = np.zeros((N, Cin, L + 2 * pad), np.float64)
        xp[:, :, pad:pad + L] = xin
        w = np.asarray(w_kio, np.float64)
        out = np.zeros((N, Cout, Lout), np.float64)
        for i in range(Lout):
            seg = xp[:, :, i * stride:i * stride + K]           # (N, Cin, K)
            out[:, :, i] = np.einsum("nck,kco->no", seg, w)
        if bias is not None:
            out += np.asarray(bias, np.float64)[None, :, None]
        return out

    def bn(z, p):
        g = np.asarray(p["gamma"], np.float64)[None, :, None]
        b = np.asarray(p["beta"], np.float64)[None, :, None]
        m = np.asarray(p["mean"], np.float64)[None, :, None]
        v = np.asarray(p["var"], np.float64)[None, :, None]
        return (z - m) / np.sqrt(v + BN_EPS) * g + b

    relu = lambda z: np.maximum(z, 0.0)
    sigmoid = lambda z: 1.0 / (1.0 + np.exp(-z))

    h = sigmoid(conv1d(x, params["conv1_w"], params["conv1_b"], 1, 3))
    t = relu(bn(conv1d(h, params["b1_w1"], None, 1, 1), params["b1_bn1"]))
    h = relu(bn(conv1d(t, params["b1_w2"], None, 1, 1), params["b1_bn2"]) + h)
    t = relu(bn(conv1d(h, params["b2_w1"], None, 2, 1), params["b2_bn1"]))
    sc = bn(conv1d(h, params["b2_wsc"], None, 2, 0), params["b2_bnsc"])
    h = relu(bn(conv1d(t, params["b2_w2"], None, 1, 1), params["b2_bn2"]) + sc)
    pooled = h.mean(axis=2)                                     # (N, 128)
    return pooled @ np.asarray(params["fc_w"], np.float64) + np.asarray(params["fc_b"], np.float64)


if __name__ == "__main__":
    num_classes = 10
    key = jax.random.PRNGKey(0)
    kx, kp = jax.random.split(key)

    # small shapes consistent with the module: batch=2, channels=4, length=16
    x = jax.random.normal(kx, (2, 4, 16), jnp.float32)          # NCL, like PyTorch
    params = init_params(kp, num_classes)

    out = signal_predictor_forward(x, params)
    out = jax.block_until_ready(out)

    assert out.shape == (2, num_classes)
    assert bool(jnp.all(jnp.isfinite(out)))
    ref = _ref_forward(x, params)
    assert np.allclose(np.asarray(out, np.float64), ref, rtol=5e-2, atol=5e-2), (
        "kernel output does not match NumPy reference")
    print("KERNEL_OK")
</pallas_src>

<mosaic_0001>
module attributes {stable_mosaic.version = 11 : i64} {
  func.func @_fused_forward_kernel(%arg0: i32, %arg1: memref<32x4xf32, #tpu.memory_space<vmem>>, %arg2: memref<28x64xf32, #tpu.memory_space<vmem>>, %arg3: memref<1x64xf32, #tpu.memory_space<vmem>>, %arg4: memref<192x64xf32, #tpu.memory_space<vmem>>, %arg5: memref<1x64xf32, #tpu.memory_space<vmem>>, %arg6: memref<192x64xf32, #tpu.memory_space<vmem>>, %arg7: memref<1x64xf32, #tpu.memory_space<vmem>>, %arg8: memref<192x128xf32, #tpu.memory_space<vmem>>, %arg9: memref<1x128xf32, #tpu.memory_space<vmem>>, %arg10: memref<64x128xf32, #tpu.memory_space<vmem>>, %arg11: memref<1x128xf32, #tpu.memory_space<vmem>>, %arg12: memref<384x128xf32, #tpu.memory_space<vmem>>, %arg13: memref<1x128xf32, #tpu.memory_space<vmem>>, %arg14: memref<128x10xf32, #tpu.memory_space<vmem>>, %arg15: memref<1x10xf32, #tpu.memory_space<vmem>>, %arg16: memref<2x10xf32, #tpu.memory_space<vmem>>, %arg17: memref<32x28xf32, #tpu.memory_space<vmem>>, %arg18: memref<32x192xf32, #tpu.memory_space<vmem>>, %arg19: memref<16x192xf32, #tpu.memory_space<vmem>>, %arg20: memref<16x384xf32, #tpu.memory_space<vmem>>) attributes {dimension_semantics = [#tpu.dimension_semantics<arbitrary>], iteration_bounds = array<i64: 1>, scalar_prefetch = 0 : i64, scratch_operands = 4 : i64, tpu.core_type = #tpu.core_type<tc>, window_params = [{pipeline_mode = #tpu.pipeline_mode<synchronous>, transform_indices = @transform_0, window_bounds = array<i64: 32, 4>}, {pipeline_mode = #tpu.pipeline_mode<synchronous>, transform_indices = @transform_1, window_bounds = array<i64: 28, 64>}, {pipeline_mode = #tpu.pipeline_mode<synchronous>, transform_indices = @transform_2, window_bounds = array<i64: 1, 64>}, {pipeline_mode = #tpu.pipeline_mode<synchronous>, transform_indices = @transform_3, window_bounds = array<i64: 192, 64>}, {pipeline_mode = #tpu.pipeline_mode<synchronous>, transform_indices = @transform_4, window_bounds = array<i64: 1, 64>}, {pipeline_mode = #tpu.pipeline_mode<synchronous>, transform_indices = @transform_5, window_bounds = array<i64: 192, 64>}, {pipeline_mode = #tpu.pipeline_mode<synchronous>, transform_indices = @transform_6, window_bounds = array<i64: 1, 64>}, {pipeline_mode = #tpu.pipeline_mode<synchronous>, transform_indices = @transform_7, window_bounds = array<i64: 192, 128>}, {pipeline_mode = #tpu.pipeline_mode<synchronous>, transform_indices = @transform_8, window_bounds = array<i64: 1, 128>}, {pipeline_mode = #tpu.pipeline_mode<synchronous>, transform_indices = @transform_9, window_bounds = array<i64: 64, 128>}, {pipeline_mode = #tpu.pipeline_mode<synchronous>, transform_indices = @transform_10, window_bounds = array<i64: 1, 128>}, {pipeline_mode = #tpu.pipeline_mode<synchronous>, transform_indices = @transform_11, window_bounds = array<i64: 384, 128>}, {pipeline_mode = #tpu.pipeline_mode<synchronous>, transform_indices = @transform_12, window_bounds = array<i64: 1, 128>}, {pipeline_mode = #tpu.pipeline_mode<synchronous>, transform_indices = @transform_13, window_bounds = array<i64: 128, 10>}, {pipeline_mode = #tpu.pipeline_mode<synchronous>, transform_indices = @transform_14, window_bounds = array<i64: 1, 10>}, {pipeline_mode = #tpu.pipeline_mode<synchronous>, transform_indices = @transform_15, window_bounds = array<i64: 2, 10>}]} {
    %c0 = arith.constant 0 : index
    %c0_0 = arith.constant 0 : index
    %0 = vector.load %arg1[%c0, %c0_0] : memref<32x4xf32, #tpu.memory_space<vmem>>, vector<32x4xf32>
    %cst = arith.constant 0.000000e+00 : f32
    %1 = vector.broadcast %cst : f32 to vector<32x28xf32>
    %c0_1 = arith.constant 0 : index
    %c0_2 = arith.constant 0 : index
    %2 = vector.load %arg17[%c0_1, %c0_2] : memref<32x28xf32, #tpu.memory_space<vmem>>, vector<32x28xf32>
    tpu.vector_store %arg17[%c0_1, %c0_2], %1 {strides = array<i32>} : memref<32x28xf32, #tpu.memory_space<vmem>>, vector<32x28xf32>,
    %3 = vector.extract_strided_slice %0 {offsets = [0, 0], sizes = [13, 4], strides = [1, 1]} : vector<32x4xf32> to vector<13x4xf32>
    %c3 = arith.constant 3 : index
    %c0_3 = arith.constant 0 : index
    %4 = vector.load %arg17[%c3, %c0_3] : memref<32x28xf32, #tpu.memory_space<vmem>>, vector<13x4xf32>
    tpu.vector_store %arg17[%c3, %c0_3], %3 {strides = array<i32>} : memref<32x28xf32, #tpu.memory_space<vmem>>, vector<13x4xf32>,
    %5 = vector.extract_strided_slice %0 {offsets = [0, 0], sizes = [14, 4], strides = [1, 1]} : vector<32x4xf32> to vector<14x4xf32>
    %c2 = arith.constant 2 : index
    %c4 = arith.constant 4 : index
    %6 = vector.load %arg17[%c2, %c4] : memref<32x28xf32, #tpu.memory_space<vmem>>, vector<14x4xf32>
    tpu.vector_store %arg17[%c2, %c4], %5 {strides = array<i32>} : memref<32x28xf32, #tpu.memory_space<vmem>>, vector<14x4xf32>,
    %7 = vector.extract_strided_slice %0 {offsets = [0, 0], sizes = [15, 4], strides = [1, 1]} : vector<32x4xf32> to vector<15x4xf32>
    %c1 = arith.constant 1 : index
    %c8 = arith.constant 8 : index
    %8 = vector.load %arg17[%c1, %c8] : memref<32x28xf32, #tpu.memory_space<vmem>>, vector<15x4xf32>
    tpu.vector_store %arg17[%c1, %c8], %7 {strides = array<i32>} : memref<32x28xf32, #tpu.memory_space<vmem>>, vector<15x4xf32>,
    %9 = vector.extract_strided_slice %0 {offsets = [0, 0], sizes = [16, 4], strides = [1, 1]} : vector<32x4xf32> to vector<16x4xf32>
    %c0_4 = arith.constant 0 : index
    %c12 = arith.constant 12 : index
    %10 = vector.load %arg17[%c0_4, %c12] : memref<32x28xf32, #tpu.memory_space<vmem>>, vector<16x4xf32>
    tpu.vector_store %arg17[%c0_4, %c12], %9 {strides = array<i32>} : memref<32x28xf32, #tpu.memory_space<vmem>>, vector<16x4xf32>,
    %11 = vector.extract_strided_slice %0 {offsets = [1, 0], sizes = [15, 4], strides = [1, 1]} : vector<32x4xf32> to vector<15x4xf32>
    %c0_5 = arith.constant 0 : index
    %c16 = arith.constant 16 : index
    %12 = vector.load %arg17[%c0_5, %c16] : memref<32x28xf32, #tpu.memory_space<vmem>>, vector<15x4xf32>
    tpu.vector_store %arg17[%c0_5, %c16], %11 {strides = array<i32>} : memref<32x28xf32, #tpu.memory_space<vmem>>, vector<15x4xf32>,
    %13 = vector.extract_strided_slice %0 {offsets = [2, 0], sizes = [14, 4], strides = [1, 1]} : vector<32x4xf32> to vector<14x4xf32>
    %c0_6 = arith.constant 0 : index
    %c20 = arith.constant 20 : index
    %14 = vector.load %arg17[%c0_6, %c20] : memref<32x28xf32, #tpu.memory_space<vmem>>, vector<14x4xf32>
    tpu.vector_store %arg17[%c0_6, %c20], %13 {strides = array<i32>} : memref<32x28xf32, #tpu.memory_space<vmem>>, vector<14x4xf32>,
    %15 = vector.extract_strided_slice %0 {offsets = [3, 0], sizes = [13, 4], strides = [1, 1]} : vector<32x4xf32> to vector<13x4xf32>
    %c0_7 = arith.constant 0 : index
    %c24 = arith.constant 24 : index
    %16 = vector.load %arg17[%c0_7, %c24] : memref<32x28xf32, #tpu.memory_space<vmem>>, vector<13x4xf32>
    tpu.vector_store %arg17[%c0_7, %c24], %15 {strides = array<i32>} : memref<32x28xf32, #tpu.memory_space<vmem>>, vector<13x4xf32>,
    %17 = vector.extract_strided_slice %0 {offsets = [16, 0], sizes = [13, 4], strides = [1, 1]} : vector<32x4xf32> to vector<13x4xf32>
    %c19 = arith.constant 19 : index
    %c0_8 = arith.constant 0 : index
    %18 = vector.load %arg17[%c19, %c0_8] : memref<32x28xf32, #tpu.memory_space<vmem>>, vector<13x4xf32>
    tpu.vector_store %arg17[%c19, %c0_8], %17 {strides = array<i32>} : memref<32x28xf32, #tpu.memory_space<vmem>>, vector<13x4xf32>,
    %19 = vector.extract_strided_slice %0 {offsets = [16, 0], sizes = [14, 4], strides = [1, 1]} : vector<32x4xf32> to vector<14x4xf32>
    %c18 = arith.constant 18 : index
    %c4_9 = arith.constant 4 : index
    %20 = vector.load %arg17[%c18, %c4_9] : memref<32x28xf32, #tpu.memory_space<vmem>>, vector<14x4xf32>
    tpu.vector_store %arg17[%c18, %c4_9], %19 {strides = array<i32>} : memref<32x28xf32, #tpu.memory_space<vmem>>, vector<14x4xf32>,
    %21 = vector.extract_strided_slice %0 {offsets = [16, 0], sizes = [15, 4], strides = [1, 1]} : vector<32x4xf32> to vector<15x4xf32>
    %c17 = arith.constant 17 : index
    %c8_10 = arith.constant 8 : index
    %22 = vector.load %arg17[%c17, %c8_10] : memref<32x28xf32, #tpu.memory_space<vmem>>, vector<15x4xf32>
    tpu.vector_store %arg17[%c17, %c8_10], %21 {strides = array<i32>} : memref<32x28xf32, #tpu.memory_space<vmem>>, vector<15x4xf32>,
    %23 = vector.extract_strided_slice %0 {offsets = [16, 0], sizes = [16, 4], strides = [1, 1]} : vector<32x4xf32> to vector<16x4xf32>
    %c16_11 = arith.constant 16 : index
    %c12_12 = arith.constant 12 : index
    %24 = vector.load %arg17[%c16_11, %c12_12] : memref<32x28xf32, #tpu.memory_space<vmem>>, vector<16x4xf32>
    tpu.vector_store %arg17[%c16_11, %c12_12], %23 {strides = array<i32>} : memref<32x28xf32, #tpu.memory_space<vmem>>, vector<16x4xf32>,
    %25 = vector.extract_strided_slice %0 {offsets = [17, 0], sizes = [15, 4], strides = [1, 1]} : vector<32x4xf32> to vector<15x4xf32>
    %c16_13 = arith.constant 16 : index
    %c16_14 = arith.constant 16 : index
    %26 = vector.load %arg17[%c16_13, %c16_14] : memref<32x28xf32, #tpu.memory_space<vmem>>, vector<15x4xf32>
    tpu.vector_store %arg17[%c16_13, %c16_14], %25 {strides = array<i32>} : memref<32x28xf32, #tpu.memory_space<vmem>>, vector<15x4xf32>,
    %27 = vector.extract_strided_slice %0 {offsets = [18, 0], sizes = [14, 4], strides = [1, 1]} : vector<32x4xf32> to vector<14x4xf32>
    %c16_15 = arith.constant 16 : index
    %c20_16 = arith.constant 20 : index
    %28 = vector.load %arg17[%c16_15, %c20_16] : memref<32x28xf32, #tpu.memory_space<vmem>>, vector<14x4xf32>
    tpu.vector_store %arg17[%c16_15, %c20_16], %27 {strides = array<i32>} : memref<32x28xf32, #tpu.memory_space<vmem>>, vector<14x4xf32>,
    %29 = vector.extract_strided_slice %0 {offsets = [19, 0], sizes = [13, 4], strides = [1, 1]} : vector<32x4xf32> to vector<13x4xf32>
    %c16_17 = arith.constant 16 : index
    %c24_18 = arith.constant 24 : index
    %30 = vector.load %arg17[%c16_17, %c24_18] : memref<32x28xf32, #tpu.memory_space<vmem>>, vector<13x4xf32>
    tpu.vector_store %arg17[%c16_17, %c24_18], %29 {strides = array<i32>} : memref<32x28xf32, #tpu.memory_space<vmem>>, vector<13x4xf32>,
    %c0_19 = arith.constant 0 : index
    %c0_20 = arith.constant 0 : index
    %31 = vector.load %arg17[%c0_19, %c0_20] : memref<32x28xf32, #tpu.memory_space<vmem>>, vector<32x28xf32>
    %c0_21 = arith.constant 0 : index
    %c0_22 = arith.constant 0 : index
    %32 = vector.load %arg2[%c0_21, %c0_22] : memref<28x64xf32, #tpu.memory_space<vmem>>, vector<28x64xf32>
    %cst_23 = arith.constant dense<0.000000e+00> : vector<32x64xf32>
    %33 = tpu.matmul %31, %32, %cst_23 {dimension_numbers = #tpu.dot_dimension_numbers<[1], [0], [0], [1], [0, 0, 1, 1], [], []>} : vector<32x28xf32>, vector<28x64xf32>, vector<32x64xf32> -> vector<32x64xf32>
    %c0_24 = arith.constant 0 : index
    %c0_25 = arith.constant 0 : index
    %34 = vector.load %arg3[%c0_24, %c0_25] : memref<1x64xf32, #tpu.memory_space<vmem>>, vector<1x64xf32>
    %35 = vector.broadcast %34 : vector<1x64xf32> to vector<32x64xf32>
    %36 = arith.addf %33, %35 : vector<32x64xf32>
    %37 = arith.negf %36 : vector<32x64xf32>
    %38 = math.exp %37 : vector<32x64xf32>
    %cst_26 = arith.constant 1.000000e+00 : f32
    %39 = vector.broadcast %cst_26 : f32 to vector<32x64xf32>
    %40 = arith.addf %39, %38 : vector<32x64xf32>
    %41 = arith.divf %39, %40 : vector<32x64xf32>
    %cst_27 = arith.constant 0.000000e+00 : f32
    %42 = vector.broadcast %cst_27 : f32 to vector<32x192xf32>
    %c0_28 = arith.constant 0 : index
    %c0_29 = arith.constant 0 : index
    %43 = vector.load %arg18[%c0_28, %c0_29] : memref<32x192xf32, #tpu.memory_space<vmem>>, vector<32x192xf32>
    tpu.vector_store %arg18[%c0_28, %c0_29], %42 {strides = array<i32>} : memref<32x192xf32, #tpu.memory_space<vmem>>, vector<32x192xf32>,
    %44 = vector.extract_strided_slice %41 {offsets = [0, 0], sizes = [15, 64], strides = [1, 1]} : vector<32x64xf32> to vector<15x64xf32>
    %c1_30 = arith.constant 1 : index
    %c0_31 = arith.constant 0 : index
    %45 = vector.load %arg18[%c1_30, %c0_31] : memref<32x192xf32, #tpu.memory_space<vmem>>, vector<15x64xf32>
    tpu.vector_store %arg18[%c1_30, %c0_31], %44 {strides = array<i32>} : memref<32x192xf32, #tpu.memory_space<vmem>>, vector<15x64xf32>,
    %46 = vector.extract_strided_slice %41 {offsets = [0, 0], sizes = [16, 64], strides = [1, 1]} : vector<32x64xf32> to vector<16x64xf32>
    %c0_32 = arith.constant 0 : index
    %c64 = arith.constant 64 : index
    %47 = vector.load %arg18[%c0_32, %c64] : memref<32x192xf32, #tpu.memory_space<vmem>>, vector<16x64xf32>
    tpu.vector_store %arg18[%c0_32, %c64], %46 {strides = array<i32>} : memref<32x192xf32, #tpu.memory_space<vmem>>, vector<16x64xf32>,
    %48 = vector.extract_strided_slice %41 {offsets = [1, 0], sizes = [15, 64], strides = [1, 1]} : vector<32x64xf32> to vector<15x64xf32>
    %c0_33 = arith.constant 0 : index
    %c128 = arith.constant 128 : index
    %49 = vector.load %arg18[%c0_33, %c128] : memref<32x192xf32, #tpu.memory_space<vmem>>, vector<15x64xf32>
    tpu.vector_store %arg18[%c0_33, %c128], %48 {strides = array<i32>} : memref<32x192xf32, #tpu.memory_space<vmem>>, vector<15x64xf32>,
    %50 = vector.extract_strided_slice %41 {offsets = [16, 0], sizes = [15, 64], strides = [1, 1]} : vector<32x64xf32> to vector<15x64xf32>
    %c17_34 = arith.constant 17 : index
    %c0_35 = arith.constant 0 : index
    %51 = vector.load %arg18[%c17_34, %c0_35] : memref<32x192xf32, #tpu.memory_space<vmem>>, vector<15x64xf32>
    tpu.vector_store %arg18[%c17_34, %c0_35], %50 {strides = array<i32>} : memref<32x192xf32, #tpu.memory_space<vmem>>, vector<15x64xf32>,
    %52 = vector.extract_strided_slice %41 {offsets = [16, 0], sizes = [16, 64], strides = [1, 1]} : vector<32x64xf32> to vector<16x64xf32>
    %c16_36 = arith.constant 16 : index
    %c64_37 = arith.constant 64 : index
    %53 = vector.load %arg18[%c16_36, %c64_37] : memref<32x192xf32, #tpu.memory_space<vmem>>, vector<16x64xf32>
    tpu.vector_store %arg18[%c16_36, %c64_37], %52 {strides = array<i32>} : memref<32x192xf32, #tpu.memory_space<vmem>>, vector<16x64xf32>,
    %54 = vector.extract_strided_slice %41 {offsets = [17, 0], sizes = [15, 64], strides = [1, 1]} : vector<32x64xf32> to vector<15x64xf32>
    %c16_38 = arith.constant 16 : index
    %c128_39 = arith.constant 128 : index
    %55 = vector.load %arg18[%c16_38, %c128_39] : memref<32x192xf32, #tpu.memory_space<vmem>>, vector<15x64xf32>
    tpu.vector_store %arg18[%c16_38, %c128_39], %54 {strides = array<i32>} : memref<32x192xf32, #tpu.memory_space<vmem>>, vector<15x64xf32>,
    %c0_40 = arith.constant 0 : index
    %c0_41 = arith.constant 0 : index
    %56 = vector.load %arg18[%c0_40, %c0_41] : memref<32x192xf32, #tpu.memory_space<vmem>>, vector<32x192xf32>
    %c0_42 = arith.constant 0 : index
    %c0_43 = arith.constant 0 : index
    %57 = vector.load %arg4[%c0_42, %c0_43] : memref<192x64xf32, #tpu.memory_space<vmem>>, vector<192x64xf32>
    %cst_44 = arith.constant dense<0.000000e+00> : vector<32x64xf32>
    %58 = tpu.matmul %56, %57, %cst_44 {dimension_numbers = #tpu.dot_dimension_numbers<[1], [0], [0], [1], [0, 0, 1, 1], [], []>} : vector<32x192xf32>, vector<192x64xf32>, vector<32x64xf32> -> vector<32x64xf32>
    %c0_45 = arith.constant 0 : index
    %c0_46 = arith.constant 0 : index
    %59 = vector.load %arg5[%c0_45, %c0_46] : memref<1x64xf32, #tpu.memory_space<vmem>>, vector<1x64xf32>
    %60 = vector.broadcast %59 : vector<1x64xf32> to vector<32x64xf32>
    %61 = arith.addf %58, %60 : vector<32x64xf32>
    %cst_47 = arith.constant 0.000000e+00 : f32
    %62 = vector.broadcast %cst_47 : f32 to vector<32x64xf32>
    %63 = arith.maximumf %61, %62 : vector<32x64xf32>
    %cst_48 = arith.constant 0.000000e+00 : f32
    %64 = vector.broadcast %cst_48 : f32 to vector<32x192xf32>
    %c0_49 = arith.constant 0 : index
    %c0_50 = arith.constant 0 : index
    %65 = vector.load %arg18[%c0_49, %c0_50] : memref<32x192xf32, #tpu.memory_space<vmem>>, vector<32x192xf32>
    tpu.vector_store %arg18[%c0_49, %c0_50], %64 {strides = array<i32>} : memref<32x192xf32, #tpu.memory_space<vmem>>, vector<32x192xf32>,
    %66 = vector.extract_strided_slice %63 {offsets = [0, 0], sizes = [15, 64], strides = [1, 1]} : vector<32x64xf32> to vector<15x64xf32>
    %c1_51 = arith.constant 1 : index
    %c0_52 = arith.constant 0 : index
    %67 = vector.load %arg18[%c1_51, %c0_52] : memref<32x192xf32, #tpu.memory_space<vmem>>, vector<15x64xf32>
    tpu.vector_store %arg18[%c1_51, %c0_52], %66 {strides = array<i32>} : memref<32x192xf32, #tpu.memory_space<vmem>>, vector<15x64xf32>,
    %68 = vector.extract_strided_slice %63 {offsets = [0, 0], sizes = [16, 64], strides = [1, 1]} : vector<32x64xf32> to vector<16x64xf32>
    %c0_53 = arith.constant 0 : index
    %c64_54 = arith.constant 64 : index
    %69 = vector.load %arg18[%c0_53, %c64_54] : memref<32x192xf32, #tpu.memory_space<vmem>>, vector<16x64xf32>
    tpu.vector_store %arg18[%c0_53, %c64_54], %68 {strides = array<i32>} : memref<32x192xf32, #tpu.memory_space<vmem>>, vector<16x64xf32>,
    %70 = vector.extract_strided_slice %63 {offsets = [1, 0], sizes = [15, 64], strides = [1, 1]} : vector<32x64xf32> to vector<15x64xf32>
    %c0_55 = arith.constant 0 : index
    %c128_56 = arith.constant 128 : index
    %71 = vector.load %arg18[%c0_55, %c128_56] : memref<32x192xf32, #tpu.memory_space<vmem>>, vector<15x64xf32>
    tpu.vector_store %arg18[%c0_55, %c128_56], %70 {strides = array<i32>} : memref<32x192xf32, #tpu.memory_space<vmem>>, vector<15x64xf32>,
    %72 = vector.extract_strided_slice %63 {offsets = [16, 0], sizes = [15, 64], strides = [1, 1]} : vector<32x64xf32> to vector<15x64xf32>
    %c17_57 = arith.constant 17 : index
    %c0_58 = arith.constant 0 : index
    %73 = vector.load %arg18[%c17_57, %c0_58] : memref<32x192xf32, #tpu.memory_space<vmem>>, vector<15x64xf32>
    tpu.vector_store %arg18[%c17_57, %c0_58], %72 {strides = array<i32>} : memref<32x192xf32, #tpu.memory_space<vmem>>, vector<15x64xf32>,
    %74 = vector.extract_strided_slice %63 {offsets = [16, 0], sizes = [16, 64], strides = [1, 1]} : vector<32x64xf32> to vector<16x64xf32>
    %c16_59 = arith.constant 16 : index
    %c64_60 = arith.constant 64 : index
    %75 = vector.load %arg18[%c16_59, %c64_60] : memref<32x192xf32, #tpu.memory_space<vmem>>, vector<16x64xf32>
    tpu.vector_store %arg18[%c16_59, %c64_60], %74 {strides = array<i32>} : memref<32x192xf32, #tpu.memory_space<vmem>>, vector<16x64xf32>,
    %76 = vector.extract_strided_slice %63 {offsets = [17, 0], sizes = [15, 64], strides = [1, 1]} : vector<32x64xf32> to vector<15x64xf32>
    %c16_61 = arith.constant 16 : index
    %c128_62 = arith.constant 128 : index
    %77 = vector.load %arg18[%c16_61, %c128_62] : memref<32x192xf32, #tpu.memory_space<vmem>>, vector<15x64xf32>
    tpu.vector_store %arg18[%c16_61, %c128_62], %76 {strides = array<i32>} : memref<32x192xf32, #tpu.memory_space<vmem>>, vector<15x64xf32>,
    %c0_63 = arith.constant 0 : index
    %c0_64 = arith.constant 0 : index
    %78 = vector.load %arg18[%c0_63, %c0_64] : memref<32x192xf32, #tpu.memory_space<vmem>>, vector<32x192xf32>
    %c0_65 = arith.constant 0 : index
    %c0_66 = arith.constant 0 : index
    %79 = vector.load %arg6[%c0_65, %c0_66] : memref<192x64xf32, #tpu.memory_space<vmem>>, vector<192x64xf32>
    %cst_67 = arith.constant dense<0.000000e+00> : vector<32x64xf32>
    %80 = tpu.matmul %78, %79, %cst_67 {dimension_numbers = #tpu.dot_dimension_numbers<[1], [0], [0], [1], [0, 0, 1, 1], [], []>} : vector<32x192xf32>, vector<192x64xf32>, vector<32x64xf32> -> vector<32x64xf32>
    %c0_68 = arith.constant 0 : index
    %c0_69 = arith.constant 0 : index
    %81 = vector.load %arg7[%c0_68, %c0_69] : memref<1x64xf32, #tpu.memory_space<vmem>>, vector<1x64xf32>
    %82 = vector.broadcast %81 : vector<1x64xf32> to vector<32x64xf32>
    %83 = arith.addf %80, %82 : vector<32x64xf32>
    %84 = arith.addf %83, %41 : vector<32x64xf32>
    %cst_70 = arith.constant 0.000000e+00 : f32
    %85 = vector.broadcast %cst_70 : f32 to vector<32x64xf32>
    %86 = arith.maximumf %84, %85 : vector<32x64xf32>
    %87 = tpu.iota {dimensions = array<i32: 0>} : vector<16x32xi32>
    %88 = tpu.iota {dimensions = array<i32: 1>} : vector<16x32xi32>
    %c2_i32 = arith.constant 2 : i32
    %89 = vector.broadcast %c2_i32 : i32 to vector<16x32xi32>
    %90 = arith.muli %89, %87 : vector<16x32xi32>
    %91 = arith.cmpi eq, %88, %90 : vector<16x32xi32>
    %92 = arith.extui %91 : vector<16x32xi1> to vector<16x32xi32>
    %93 = arith.sitofp %92 : vector<16x32xi32> to vector<16x32xf32>
    %cst_71 = arith.constant dense<0.000000e+00> : vector<16x64xf32>
    %94 = tpu.matmul %93, %86, %cst_71 {dimension_numbers = #tpu.dot_dimension_numbers<[1], [0], [0], [1], [0, 0, 1, 1], [], []>} : vector<16x32xf32>, vector<32x64xf32>, vector<16x64xf32> -> vector<16x64xf32>
    %c2_i32_72 = arith.constant 2 : i32
    %95 = vector.broadcast %c2_i32_72 : i32 to vector<16x32xi32>
    %96 = arith.muli %95, %87 : vector<16x32xi32>
    %c1_i32 = arith.constant 1 : i32
    %97 = vector.broadcast %c1_i32 : i32 to vector<16x32xi32>
    %98 = arith.addi %96, %97 : vector<16x32xi32>
    %99 = arith.cmpi eq, %88, %98 : vector<16x32xi32>
    %100 = arith.extui %99 : vector<16x32xi1> to vector<16x32xi32>
    %101 = arith.sitofp %100 : vector<16x32xi32> to vector<16x32xf32>
    %cst_73 = arith.constant dense<0.000000e+00> : vector<16x64xf32>
    %102 = tpu.matmul %101, %86, %cst_73 {dimension_numbers = #tpu.dot_dimension_numbers<[1], [0], [0], [1], [0, 0, 1, 1], [], []>} : vector<16x32xf32>, vector<32x64xf32>, vector<16x64xf32> -> vector<16x64xf32>
    %cst_74 = arith.constant 0.000000e+00 : f32
    %103 = vector.broadcast %cst_74 : f32 to vector<16x192xf32>
    %c0_75 = arith.constant 0 : index
    %c0_76 = arith.constant 0 : index
    %104 = vector.load %arg19[%c0_75, %c0_76] : memref<16x192xf32, #tpu.memory_space<vmem>>, vector<16x192xf32>
    tpu.vector_store %arg19[%c0_75, %c0_76], %103 {strides = array<i32>} : memref<16x192xf32, #tpu.memory_space<vmem>>, vector<16x192xf32>,
    %c0_77 = arith.constant 0 : index
    %c64_78 = arith.constant 64 : index
    %105 = vector.load %arg19[%c0_77, %c64_78] : memref<16x192xf32, #tpu.memory_space<vmem>>, vector<16x64xf32>
    tpu.vector_store %arg19[%c0_77, %c64_78], %94 {strides = array<i32>} : memref<16x192xf32, #tpu.memory_space<vmem>>, vector<16x64xf32>,
    %c0_79 = arith.constant 0 : index
    %c128_80 = arith.constant 128 : index
    %106 = vector.load %arg19[%c0_79, %c128_80] : memref<16x192xf32, #tpu.memory_space<vmem>>, vector<16x64xf32>
    tpu.vector_store %arg19[%c0_79, %c128_80], %102 {strides = array<i32>} : memref<16x192xf32, #tpu.memory_space<vmem>>, vector<16x64xf32>,
    %107 = vector.extract_strided_slice %102 {offsets = [0, 0], sizes = [7, 64], strides = [1, 1]} : vector<16x64xf32> to vector<7x64xf32>
    %c1_81 = arith.constant 1 : index
    %c0_82 = arith.constant 0 : index
    %108 = vector.load %arg19[%c1_81, %c0_82] : memref<16x192xf32, #tpu.memory_space<vmem>>, vector<7x64xf32>
    tpu.vector_store %arg19[%c1_81, %c0_82], %107 {strides = array<i32>} : memref<16x192xf32, #tpu.memory_space<vmem>>, vector<7x64xf32>,
    %109 = vector.extract_strided_slice %102 {offsets = [8, 0], sizes = [7, 64], strides = [1, 1]} : vector<16x64xf32> to vector<7x64xf32>
    %c9 = arith.constant 9 : index
    %c0_83 = arith.constant 0 : index
    %110 = vector.load %arg19[%c9, %c0_83] : memref<16x192xf32, #tpu.memory_space<vmem>>, vector<7x64xf32>
    tpu.vector_store %arg19[%c9, %c0_83], %109 {strides = array<i32>} : memref<16x192xf32, #tpu.memory_space<vmem>>, vector<7x64xf32>,
    %c0_84 = arith.constant 0 : index
    %c0_85 = arith.constant 0 : index
    %111 = vector.load %arg19[%c0_84, %c0_85] : memref<16x192xf32, #tpu.memory_space<vmem>>, vector<16x192xf32>
    %c0_86 = arith.constant 0 : index
    %c0_87 = arith.constant 0 : index
    %112 = vector.load %arg8[%c0_86, %c0_87] : memref<192x128xf32, #tpu.memory_space<vmem>>, vector<192x128xf32>
    %cst_88 = arith.constant dense<0.000000e+00> : vector<16x128xf32>
    %113 = tpu.matmul %111, %112, %cst_88 {dimension_numbers = #tpu.dot_dimension_numbers<[1], [0], [0], [1], [0, 0, 1, 1], [], []>} : vector<16x192xf32>, vector<192x128xf32>, vector<16x128xf32> -> vector<16x128xf32>
    %c0_89 = arith.constant 0 : index
    %c0_90 = arith.constant 0 : index
    %114 = vector.load %arg9[%c0_89, %c0_90] : memref<1x128xf32, #tpu.memory_space<vmem>>, vector<1x128xf32>
    %115 = vector.broadcast %114 : vector<1x128xf32> to vector<16x128xf32>
    %116 = arith.addf %113, %115 : vector<16x128xf32>
    %cst_91 = arith.constant 0.000000e+00 : f32
    %117 = vector.broadcast %cst_91 : f32 to vector<16x128xf32>
    %118 = arith.maximumf %116, %117 : vector<16x128xf32>
    %c0_92 = arith.constant 0 : index
    %c0_93 = arith.constant 0 : index
    %119 = vector.load %arg10[%c0_92, %c0_93] : memref<64x128xf32, #tpu.memory_space<vmem>>, vector<64x128xf32>
    %cst_94 = arith.constant dense<0.000000e+00> : vector<16x128xf32>
    %120 = tpu.matmul %94, %119, %cst_94 {dimension_numbers = #tpu.dot_dimension_numbers<[1], [0], [0], [1], [0, 0, 1, 1], [], []>} : vector<16x64xf32>, vector<64x128xf32>, vector<16x128xf32> -> vector<16x128xf32>
    %c0_95 = arith.constant 0 : index
    %c0_96 = arith.constant 0 : index
    %121 = vector.load %arg11[%c0_95, %c0_96] : memref<1x128xf32, #tpu.memory_space<vmem>>, vector<1x128xf32>
    %122 = vector.broadcast %121 : vector<1x128xf32> to vector<16x128xf32>
    %123 = arith.addf %120, %122 : vector<16x128xf32>
    %cst_97 = arith.constant 0.000000e+00 : f32
    %124 = vector.broadcast %cst_97 : f32 to vector<16x384xf32>
    %c0_98 = arith.constant 0 : index
    %c0_99 = arith.constant 0 : index
    %125 = vector.load %arg20[%c0_98, %c0_99] : memref<16x384xf32, #tpu.memory_space<vmem>>, vector<16x384xf32>
    tpu.vector_store %arg20[%c0_98, %c0_99], %124 {strides = array<i32>} : memref<16x384xf32, #tpu.memory_space<vmem>>, vector<16x384xf32>,
    %126 = vector.extract_strided_slice %118 {offsets = [0, 0], sizes = [7, 128], strides = [1, 1]} : vector<16x128xf32> to vector<7x128xf32>
    %c1_100 = arith.constant 1 : index
    %c0_101 = arith.constant 0 : index
    %127 = vector.load %arg20[%c1_100, %c0_101] : memref<16x384xf32, #tpu.memory_space<vmem>>, vector<7x128xf32>
    tpu.vector_store %arg20[%c1_100, %c0_101], %126 {strides = array<i32>} : memref<16x384xf32, #tpu.memory_space<vmem>>, vector<7x128xf32>,
    %128 = vector.extract_strided_slice %118 {offsets = [0, 0], sizes = [8, 128], strides = [1, 1]} : vector<16x128xf32> to vector<8x128xf32>
    %c0_102 = arith.constant 0 : index
    %c128_103 = arith.constant 128 : index
    %129 = vector.load %arg20[%c0_102, %c128_103] : memref<16x384xf32, #tpu.memory_space<vmem>>, vector<8x128xf32>
    tpu.vector_store %arg20[%c0_102, %c128_103], %128 {strides = array<i32>} : memref<16x384xf32, #tpu.memory_space<vmem>>, vector<8x128xf32>,
    %130 = vector.extract_strided_slice %118 {offsets = [1, 0], sizes = [7, 128], strides = [1, 1]} : vector<16x128xf32> to vector<7x128xf32>
    %c0_104 = arith.constant 0 : index
    %c256 = arith.constant 256 : index
    %131 = vector.load %arg20[%c0_104, %c256] : memref<16x384xf32, #tpu.memory_space<vmem>>, vector<7x128xf32>
    tpu.vector_store %arg20[%c0_104, %c256], %130 {strides = array<i32>} : memref<16x384xf32, #tpu.memory_space<vmem>>, vector<7x128xf32>,
    %132 = vector.extract_strided_slice %118 {offsets = [8, 0], sizes = [7, 128], strides = [1, 1]} : vector<16x128xf32> to vector<7x128xf32>
    %c9_105 = arith.constant 9 : index
    %c0_106 = arith.constant 0 : index
    %133 = vector.load %arg20[%c9_105, %c0_106] : memref<16x384xf32, #tpu.memory_space<vmem>>, vector<7x128xf32>
    tpu.vector_store %arg20[%c9_105, %c0_106], %132 {strides = array<i32>} : memref<16x384xf32, #tpu.memory_space<vmem>>, vector<7x128xf32>,
    %134 = vector.extract_strided_slice %118 {offsets = [8, 0], sizes = [8, 128], strides = [1, 1]} : vector<16x128xf32> to vector<8x128xf32>
    %c8_107 = arith.constant 8 : index
    %c128_108 = arith.constant 128 : index
    %135 = vector.load %arg20[%c8_107, %c128_108] : memref<16x384xf32, #tpu.memory_space<vmem>>, vector<8x128xf32>
    tpu.vector_store %arg20[%c8_107, %c128_108], %134 {strides = array<i32>} : memref<16x384xf32, #tpu.memory_space<vmem>>, vector<8x128xf32>,
    %136 = vector.extract_strided_slice %118 {offsets = [9, 0], sizes = [7, 128], strides = [1, 1]} : vector<16x128xf32> to vector<7x128xf32>
    %c8_109 = arith.constant 8 : index
    %c256_110 = arith.constant 256 : index
    %137 = vector.load %arg20[%c8_109, %c256_110] : memref<16x384xf32, #tpu.memory_space<vmem>>, vector<7x128xf32>
    tpu.vector_store %arg20[%c8_109, %c256_110], %136 {strides = array<i32>} : memref<16x384xf32, #tpu.memory_space<vmem>>, vector<7x128xf32>,
    %c0_111 = arith.constant 0 : index
    %c0_112 = arith.constant 0 : index
    %138 = vector.load %arg20[%c0_111, %c0_112] : memref<16x384xf32, #tpu.memory_space<vmem>>, vector<16x384xf32>
    %c0_113 = arith.constant 0 : index
    %c0_114 = arith.constant 0 : index
    %139 = vector.load %arg12[%c0_113, %c0_114] : memref<384x128xf32, #tpu.memory_space<vmem>>, vector<384x128xf32>
    %cst_115 = arith.constant dense<0.000000e+00> : vector<16x128xf32>
    %140 = tpu.matmul %138, %139, %cst_115 {dimension_numbers = #tpu.dot_dimension_numbers<[1], [0], [0], [1], [0, 0, 1, 1], [], []>} : vector<16x384xf32>, vector<384x128xf32>, vector<16x128xf32> -> vector<16x128xf32>
    %c0_116 = arith.constant 0 : index
    %c0_117 = arith.constant 0 : index
    %141 = vector.load %arg13[%c0_116, %c0_117] : memref<1x128xf32, #tpu.memory_space<vmem>>, vector<1x128xf32>
    %142 = vector.broadcast %141 : vector<1x128xf32> to vector<16x128xf32>
    %143 = arith.addf %140, %142 : vector<16x128xf32>
    %144 = arith.addf %143, %123 : vector<16x128xf32>
    %cst_118 = arith.constant 0.000000e+00 : f32
    %145 = vector.broadcast %cst_118 : f32 to vector<16x128xf32>
    %146 = arith.maximumf %144, %145 : vector<16x128xf32>
    %147 = tpu.iota {dimensions = array<i32: 0>} : vector<2x16xi32>
    %148 = tpu.iota {dimensions = array<i32: 1>} : vector<2x16xi32>
    %c8_i32 = arith.constant 8 : i32
    %149 = vector.broadcast %c8_i32 : i32 to vector<2x16xi32>
    %150 = arith.muli %147, %149 : vector<2x16xi32>
    %151 = arith.cmpi sge, %148, %150 : vector<2x16xi32>
    %c1_i32_119 = arith.constant 1 : i32
    %152 = vector.broadcast %c1_i32_119 : i32 to vector<2x16xi32>
    %153 = arith.addi %147, %152 : vector<2x16xi32>
    %c8_i32_120 = arith.constant 8 : i32
    %154 = vector.broadcast %c8_i32_120 : i32 to vector<2x16xi32>
    %155 = arith.muli %153, %154 : vector<2x16xi32>
    %156 = arith.cmpi slt, %148, %155 : vector<2x16xi32>
    %157 = arith.andi %151, %156 : vector<2x16xi1>
    %cst_121 = arith.constant 1.250000e-01 : f32
    %cst_122 = arith.constant 0.000000e+00 : f32
    %158 = vector.broadcast %cst_121 : f32 to vector<2x16xf32>
    %159 = vector.broadcast %cst_122 : f32 to vector<2x16xf32>
    %160 = arith.select %157, %158, %159 : vector<2x16xi1>, vector<2x16xf32>
    %cst_123 = arith.constant dense<0.000000e+00> : vector<2x128xf32>
    %161 = tpu.matmul %160, %146, %cst_123 {dimension_numbers = #tpu.dot_dimension_numbers<[1], [0], [0], [1], [0, 0, 1, 1], [], []>} : vector<2x16xf32>, vector<16x128xf32>, vector<2x128xf32> -> vector<2x128xf32>
    %c0_124 = arith.constant 0 : index
    %c0_125 = arith.constant 0 : index
    %162 = vector.load %arg14[%c0_124, %c0_125] : memref<128x10xf32, #tpu.memory_space<vmem>>, vector<128x10xf32>
    %cst_126 = arith.constant dense<0.000000e+00> : vector<2x10xf32>
    %163 = tpu.matmul %161, %162, %cst_126 {dimension_numbers = #tpu.dot_dimension_numbers<[1], [0], [0], [1], [0, 0, 1, 1], [], []>} : vector<2x128xf32>, vector<128x10xf32>, vector<2x10xf32> -> vector<2x10xf32>
    %c0_127 = arith.constant 0 : index
    %c0_128 = arith.constant 0 : index
    %164 = vector.load %arg15[%c0_127, %c0_128] : memref<1x10xf32, #tpu.memory_space<vmem>>, vector<1x10xf32>
    %165 = vector.broadcast %164 : vector<1x10xf32> to vector<2x10xf32>
    %166 = arith.addf %163, %165 : vector<2x10xf32>
    %c0_129 = arith.constant 0 : index
    %c0_130 = arith.constant 0 : index
    %167 = vector.load %arg16[%c0_129, %c0_130] : memref<2x10xf32, #tpu.memory_space<vmem>>, vector<2x10xf32>
    tpu.vector_store %arg16[%c0_129, %c0_130], %166 {strides = array<i32>} : memref<2x10xf32, #tpu.memory_space<vmem>>, vector<2x10xf32>,
    return
  }
  func.func @transform_0(%arg0: i32) -> (i32, i32) {
    %c0_i32 = arith.constant 0 : i32
    %c0_i32_0 = arith.constant 0 : i32
    %c0_i32_1 = arith.constant 0 : i32
    return %c0_i32, %c0_i32_0 : i32, i32
  }
  func.func @transform_1(%arg0: i32) -> (i32, i32) {
    %c0_i32 = arith.constant 0 : i32
    %c0_i32_0 = arith.constant 0 : i32
    %c0_i32_1 = arith.constant 0 : i32
    return %c0_i32, %c0_i32_0 : i32, i32
  }
  func.func @transform_2(%arg0: i32) -> (i32, i32) {
    %c0_i32 = arith.constant 0 : i32
    %c0_i32_0 = arith.constant 0 : i32
    %c0_i32_1 = arith.constant 0 : i32
    return %c0_i32, %c0_i32_0 : i32, i32
  }
  func.func @transform_3(%arg0: i32) -> (i32, i32) {
    %c0_i32 = arith.constant 0 : i32
    %c0_i32_0 = arith.constant 0 : i32
    %c0_i32_1 = arith.constant 0 : i32
    return %c0_i32, %c0_i32_0 : i32, i32
  }
  func.func @transform_4(%arg0: i32) -> (i32, i32) {
    %c0_i32 = arith.constant 0 : i32
    %c0_i32_0 = arith.constant 0 : i32
    %c0_i32_1 = arith.constant 0 : i32
    return %c0_i32, %c0_i32_0 : i32, i32
  }
  func.func @transform_5(%arg0: i32) -> (i32, i32) {
    %c0_i32 = arith.constant 0 : i32
    %c0_i32_0 = arith.constant 0 : i32
    %c0_i32_1 = arith.constant 0 : i32
    return %c0_i32, %c0_i32_0 : i32, i32
  }
  func.func @transform_6(%arg0: i32) -> (i32, i32) {
    %c0_i32 = arith.constant 0 : i32
    %c0_i32_0 = arith.constant 0 : i32
    %c0_i32_1 = arith.constant 0 : i32
    return %c0_i32, %c0_i32_0 : i32, i32
  }
  func.func @transform_7(%arg0: i32) -> (i32, i32) {
    %c0_i32 = arith.constant 0 : i32
    %c0_i32_0 = arith.constant 0 : i32
    %c0_i32_1 = arith.constant 0 : i32
    return %c0_i32, %c0_i32_0 : i32, i32
  }
  func.func @transform_8(%arg0: i32) -> (i32, i32) {
    %c0_i32 = arith.constant 0 : i32
    %c0_i32_0 = arith.constant 0 : i32
    %c0_i32_1 = arith.constant 0 : i32
    return %c0_i32, %c0_i32_0 : i32, i32
  }
  func.func @transform_9(%arg0: i32) -> (i32, i32) {
    %c0_i32 = arith.constant 0 : i32
    %c0_i32_0 = arith.constant 0 : i32
    %c0_i32_1 = arith.constant 0 : i32
    return %c0_i32, %c0_i32_0 : i32, i32
  }
  func.func @transform_10(%arg0: i32) -> (i32, i32) {
    %c0_i32 = arith.constant 0 : i32
    %c0_i32_0 = arith.constant 0 : i32
    %c0_i32_1 = arith.constant 0 : i32
    return %c0_i32, %c0_i32_0 : i32, i32
  }
  func.func @transform_11(%arg0: i32) -> (i32, i32) {
    %c0_i32 = arith.constant 0 : i32
    %c0_i32_0 = arith.constant 0 : i32
    %c0_i32_1 = arith.constant 0 : i32
    return %c0_i32, %c0_i32_0 : i32, i32
  }
  func.func @transform_12(%arg0: i32) -> (i32, i32) {
    %c0_i32 = arith.constant 0 : i32
    %c0_i32_0 = arith.constant 0 : i32
    %c0_i32_1 = arith.constant 0 : i32
    return %c0_i32, %c0_i32_0 : i32, i32
  }
  func.func @transform_13(%arg0: i32) -> (i32, i32) {
    %c0_i32 = arith.constant 0 : i32
    %c0_i32_0 = arith.constant 0 : i32
    %c0_i32_1 = arith.constant 0 : i32
    return %c0_i32, %c0_i32_0 : i32, i32
  }
  func.func @transform_14(%arg0: i32) -> (i32, i32) {
    %c0_i32 = arith.constant 0 : i32
    %c0_i32_0 = arith.constant 0 : i32
    %c0_i32_1 = arith.constant 0 : i32
    return %c0_i32, %c0_i32_0 : i32, i32
  }
  func.func @transform_15(%arg0: i32) -> (i32, i32) {
    %c0_i32 = arith.constant 0 : i32
    %c0_i32_0 = arith.constant 0 : i32
    %c0_i32_1 = arith.constant 0 : i32
    return %c0_i32, %c0_i32_0 : i32, i32
  }
}

</mosaic_0001>

<bundles_post_ra>
// kernel: signal_predictor_forward.1
= control target key start
LH: loop header
LB: loop body
LE: loop exit
PB: predicated region body
PF: predicated region fallthrough
CT: control target
= control target key end

     0   :  { %vm55_vm0 = vcmask 228352   ;;  %s1890_s20 = smov 8   ;;  %s1891_s21 = smov 4   ;;  %vm60_vm1 = vcmask 31744   ;;  %v1892_v4 = vmov 0.0   ;;  %vm62_vm2 = vcmask 28672   ;;  %s2743_s0 = inlined_call_operand.vmem [shape: f32[32,4], index: 0, kind: input, shape index: {}]   ;;  %s2744_s1 = inlined_call_operand.vmem [shape: f32[28,64], index: 1, kind: input, shape index: {}]   ;;  %s2745_s2 = inlined_call_operand.vmem [shape: f32[1,64], index: 2, kind: input, shape index: {}]   ;;  %s2746_s3 = inlined_call_operand.vmem [shape: f32[192,64], index: 3, kind: input, shape index: {}]   ;;  %s2747_s4 = inlined_call_operand.vmem [shape: f32[1,64], index: 4, kind: input, shape index: {}]   ;;  %s2748_s5 = inlined_call_operand.vmem [shape: f32[192,64], index: 5, kind: input, shape index: {}]   ;;  %s2749_s6 = inlined_call_operand.vmem [shape: f32[1,64], index: 6, kind: input, shape index: {}]   ;;  %s2750_s7 = inlined_call_operand.vmem [shape: f32[192,128], index: 7, kind: input, shape index: {}]   ;;  %s2751_s8 = inlined_call_operand.vmem [shape: f32[1,128], index: 8, kind: input, shape index: {}]   ;;  %s2752_s9 = inlined_call_operand.vmem [shape: f32[64,128], index: 9, kind: input, shape index: {}]   ;;  %s2753_s10 = inlined_call_operand.vmem [shape: f32[1,128], index: 10, kind: input, shape index: {}]   ;;  %s2754_s11 = inlined_call_operand.vmem [shape: f32[384,128], index: 11, kind: input, shape index: {}]   ;;  %s2755_s12 = inlined_call_operand.vmem [shape: f32[1,128], index: 12, kind: input, shape index: {}]   ;;  %s2756_s13 = inlined_call_operand.vmem [shape: f32[128,10], index: 13, kind: input, shape index: {}]   ;;  %s2757_s14 = inlined_call_operand.vmem [shape: f32[1,10], index: 14, kind: input, shape index: {}]   ;;  %s2758_s15 = inlined_call_operand.hbm [shape: f32[2,10], index: 15, kind: output, shape index: {}]  }
   0x1   :  { %v51_v0 = vld [vmem:[%s2743_s0] sm:$0xff]  ;;  %v52_v1 = vld [vmem:[%s2743_s0 + $0x8] sm:$0xff]  ;;  %v54_v2 = vld [vmem:[%s2743_s0 + $0x18] sm:$0xff]  ;;  %56 = vst.msk [vmem:[#allocation2] sm:$0xff] %vm55_vm0, %v1892_v4  ;;  %626 = vmatprep.subr.mxu0 %v1892_v4 }
   0x2   :  { %76 = vrot.lane.b32.xlu1 %v51_v0, %s1890_s20  ;;  %66 = vrot.lane.b32.xlu0 %v51_v0, %s1891_s21  ;;  %v53_v3 = vld [vmem:[%s2743_s0 + $0x10] sm:$0xff]  ;;  %57 = vst.msk [vmem:[#allocation2 + $0x8] sm:$0xff] %vm55_vm0, %v1892_v4  ;;  %58 = vst.msk [vmem:[#allocation2 + $0x10] sm:$0xff] %vm55_vm0, %v1892_v4 }
   0x3   :  { %59 = vst.msk [vmem:[#allocation2 + $0x18] sm:$0xff] %vm55_vm0, %v1892_v4  ;;  %317 = vst [vmem:[#allocation3] sm:$0xff] %v1892_v4 }
   0x4   :  { %320 = vst [vmem:[#allocation3 + $0x10] sm:$0xff] %v1892_v4  ;;  %322 = vst [vmem:[#allocation3 + $0x20] sm:$0xff] %v1892_v4 }
   0x5   :  { %324 = vst [vmem:[#allocation3 + $0x30] sm:$0xff] %v1892_v4  ;;  %903 = vst [vmem:[#allocation4] sm:$0xff] %v1892_v4 }
   0x6   :  { %905 = vst [vmem:[#allocation4 + $0x10] sm:$0xff] %v1892_v4  ;;  %1139 = vst [vmem:[#allocation5 + $0x28] sm:$0xff] %v1892_v4 }
   0x7   :  { %1141 = vst [vmem:[#allocation5 + $0x8] sm:$0xff] %v1892_v4  ;;  %1142 = vst [vmem:[#allocation5] sm:$0xff] %v1892_v4 }
   0x8   :  { %1144 = vst [vmem:[#allocation5 + $0x20] sm:$0xff] %v1892_v4  ;;  %61 = vst.msk [vmem:[#allocation2 + $0x3] sm:$0xff] %vm60_vm1, %v51_v0 }
   0x9   :  { %125 = vst.msk [vmem:[#allocation2 + $0x13] sm:$0xff] %vm60_vm1, %v53_v3 }
   0xa   :  { %63 = vst.msk [vmem:[#allocation2 + $0xb] sm:$0x1f] %vm62_vm2, %v52_v1  ;;  %126 = vst.msk [vmem:[#allocation2 + $0x1b] sm:$0x1f] %vm62_vm2, %v54_v2 }
   0xb   :  { %20 = vsyncpa [#allocation7], 0  ;;  %78 = vrot.lane.b32.xlu1 %v52_v1, %s1890_s20  ;;  %68 = vrot.lane.b32.xlu0 %v52_v1, %s1891_s21  ;;  %v184_v5 = vld [vmem:[%s2744_s1 + $0x18] sm:$0xf]  ;;  %vm204_vm3 = vcmask 1043456   ;;  %s1893_s29 = smov 12  }
   0xc   :  { %v183_v6 = vld [vmem:[%s2744_s1 + $0x10] sm:$0xff]  ;;  %1709 = vmatprep.subr.msk.mxu1 %vm204_vm3, %v184_v5  ;;  %v182_v7 = vld [vmem:[%s2744_s1 + $0x8] sm:$0xff]  ;;  %s1894_s19 = smov 16   ;;  %v181_v8 = vld [vmem:[%s2744_s1] sm:$0xff]  ;;  %s1895_s24 = smov 20   ;;  %vm72_vm4 = vcmask 64544  }
   0xd   :  { %1710 = vmatpush3.msk.msra.mxu1 %vm204_vm3, %v184_v5  ;;  %s1896_s25 = smov 24   ;;  %vm82_vm5 = vcmask 97344   ;;  %vm74_vm6 = vcmask 62496   ;;  %vm84_vm7 = vcmask 96320   ;;  %vm92_vm8 = vcmask 130144   ;;  %v402_v37 = vld [vmem:[%s2746_s3 + $0x78] sm:$0xff] }
   0xe   :  { %1711 = vmatprep.subr.mxu1 %v183_v6  ;;  %vm103_vm9 = vcmask 162944   ;;  %vm101_vm10 = vcmask 162945   ;;  %vm113_vm11 = vcmask 195744   ;;  %vm111_vm12 = vcmask 195746   ;;  %v401_v38 = vld [vmem:[%s2746_s3 + $0x70] sm:$0xff]  ;;  %v400_v39 = vld [vmem:[%s2746_s3 + $0x68] sm:$0xff] }
   0xf   :  { %88 = vrot.lane.b32.xlu1 %v52_v1, %s1893_s29  ;;  %86 = vrot.lane.b32.xlu0 %v51_v0, %s1893_s29  ;;  %vm123_vm13 = vcmask 228544   ;;  %vm121_vm14 = vcmask 228547   ;;  %vm318_vm15 = vcmask 523264   ;;  %v399_v40 = vld [vmem:[%s2746_s3 + $0x60] sm:$0xff]  ;;  %v398_v41 = vld [vmem:[%s2746_s3 + $0x58] sm:$0xff]  ;;  %vm346_vm1 = vcmask 1046528  }
  0x10   :  { %1712 = vmatpush3.msra.mxu1 %v183_v6  ;;  %319 = vst.msk [vmem:[#allocation3 + $0x8] sm:$0xff] %vm318_vm15, %v1892_v4  ;;  %321 = vst.msk [vmem:[#allocation3 + $0x18] sm:$0xff] %vm318_vm15, %v1892_v4  ;;  %v397_v42 = vld [vmem:[%s2746_s3 + $0x50] sm:$0xff]  ;;  %v396_v43 = vld [vmem:[%s2746_s3 + $0x48] sm:$0xff]  ;;  %vm328_vm2 = vcmask 1040384   ;;  %vm334_vm3 = vcmask 523265  }
  0x11   :  { %1713 = vmatprep.subr.mxu1 %v182_v7  ;;  %323 = vst.msk [vmem:[#allocation3 + $0x28] sm:$0xff] %vm318_vm15, %v1892_v4  ;;  %325 = vst.msk [vmem:[#allocation3 + $0x38] sm:$0xff] %vm318_vm15, %v1892_v4  ;;  %v395_v44 = vld [vmem:[%s2746_s3 + $0x40] sm:$0xff]  ;;  %v394_v45 = vld [vmem:[%s2746_s3 + $0x38] sm:$0xff]  ;;  %s1899_s23 = smov [#allocation6]  }
  0x12   :  { %1714 = vmatpush3.msra.mxu1 %v182_v7  ;;  %904 = vst.msk [vmem:[#allocation4 + $0x8] sm:$0xff] %vm318_vm15, %v1892_v4  ;;  %906 = vst.msk [vmem:[#allocation4 + $0x18] sm:$0xff] %vm318_vm15, %v1892_v4  ;;  %v393_v46 = vld [vmem:[%s2746_s3 + $0x30] sm:$0xff]  ;;  %v392_v47 = vld [vmem:[%s2746_s3 + $0x28] sm:$0xff] }
  0x13   :  { %97 = vrot.lane.b32.xlu1 %v52_v1, %s1894_s19  ;;  %95 = vrot.lane.b32.xlu0 %v51_v0, %s1894_s19  ;;  %v391_v48 = vld [vmem:[%s2746_s3 + $0x20] sm:$0xff]  ;;  %v390_v49 = vld [vmem:[%s2746_s3 + $0x18] sm:$0xff] }
  0x14   :  { %1715 = vmatprep.subr.mxu1 %v181_v8  ;;  %v389_v50 = vld [vmem:[%s2746_s3 + $0x10] sm:$0xff]  ;;  %v388_v51 = vld [vmem:[%s2746_s3 + $0x8] sm:$0xff]  ;;  %v387_v52 = vld [vmem:[%s2746_s3] sm:$0xff] }
  0x15   :  { %1716 = vmatpush3.msra.mxu1 %v181_v8  ;;  %v410_v53 = vld [vmem:[%s2746_s3 + $0xb8] sm:$0xff]  ;;  %v409_v54 = vld [vmem:[%s2746_s3 + $0xb0] sm:$0xff]  ;;  %v408_v55 = vld [vmem:[%s2746_s3 + $0xa8] sm:$0xff] }
  0x16   :  { %430 = vmatprep.subr.mxu1 %v1892_v4  ;;  %v1566_v56 = vld [vmem:[%s2745_s2] ss:$0 sm:$0xff]  ;;  %v406_v6 = vld [vmem:[%s2746_s3 + $0x98] sm:$0xff] }
  0x17   :  { %107 = vrot.lane.b32.xlu1 %v52_v1, %s1895_s24  ;;  %105 = vrot.lane.b32.xlu0 %v51_v0, %s1895_s24 }
  0x1b   :  { %117 = vrot.lane.b32.xlu1 %v52_v1, %s1896_s25  ;;  %115 = vrot.lane.b32.xlu0 %v51_v0, %s1896_s25 }
  0x1f   :  { %131 = vrot.lane.b32.xlu1 %v54_v2, %s1891_s21  ;;  %129 = vrot.lane.b32.xlu0 %v53_v3, %s1891_s21 }
  0x23   :  { %139 = vrot.lane.b32.xlu1 %v54_v2, %s1890_s20  ;;  %137 = vrot.lane.b32.xlu0 %v53_v3, %s1890_s20 }
  0x27   :  { %147 = vrot.lane.b32.xlu1 %v54_v2, %s1893_s29  ;;  %145 = vrot.lane.b32.xlu0 %v53_v3, %s1893_s29 }
  0x2b   :  { %155 = vrot.lane.b32.xlu1 %v54_v2, %s1894_s19  ;;  %153 = vrot.lane.b32.xlu0 %v53_v3, %s1894_s19 }
  0x2f   :  { %163 = vrot.lane.b32.xlu1 %v54_v2, %s1895_s24  ;;  %161 = vrot.lane.b32.xlu0 %v53_v3, %s1895_s24  ;;  %s1897_s24 = smov 64  }
  0x33   :  { %171 = vrot.lane.b32.xlu1 %v54_v2, %s1896_s25  ;;  %169 = vrot.lane.b32.xlu0 %v53_v3, %s1896_s25  ;;  %v407_v3 = vld [vmem:[%s2746_s3 + $0xa0] sm:$0xff] }
  0x74   :  { %v77_v9 = vpop.permute.xlu1 %76  ;;  %v67_v10 = vpop.permute.xlu0 %66 }
  0x75   :  { %73 = vst.msk [vmem:[#allocation2 + $0x2] sm:$0xff] %vm72_vm4, %v67_v10 }
  0x76   :  { %83 = vst.msk [vmem:[#allocation2 + $0x1] sm:$0xff] %vm82_vm5, %v77_v9  ;;  %v405_v9 = vld [vmem:[%s2746_s3 + $0x90] sm:$0xff] }
  0x7d   :  { %v79_v11 = vpop.permute.xlu1 %78  ;;  %v69_v12 = vpop.permute.xlu0 %68 }
  0x7e   :  { %75 = vst.msk [vmem:[#allocation2 + $0xa] sm:$0x3f] %vm74_vm6, %v69_v12  ;;  %v404_v12 = vld [vmem:[%s2746_s3 + $0x88] sm:$0xff] }
  0x7f   :  { %85 = vst.msk [vmem:[#allocation2 + $0x9] sm:$0x7f] %vm84_vm7, %v79_v11 }
  0x81   :  { %v89_v13 = vpop.permute.xlu1 %88  ;;  %v87_v14 = vpop.permute.xlu0 %86 }
  0x82   :  { %94 = vst.msk [vmem:[#allocation2 + $0x8] sm:$0xff] %vm92_vm8, %v89_v13  ;;  %93 = vst.msk [vmem:[#allocation2] sm:$0xff] %vm92_vm8, %v87_v14  ;;  %v403_v14 = vld [vmem:[%s2746_s3 + $0x80] sm:$0xff]  ;;  %s1558_s3 = sshll.u32 %s1899_s23, 4  ;;  %s1559_s3 = int_to_ptr.vmem [resolvable:$true] %s1558_s3 }
  0x83   :  { %s1868_s25 = scalar_lea.vmem %s1559_s3, 32  ;;  %p1873_p1 = scmp.lt.s32.totalorder %s1559_s3, %s1559_s3 }
  0x84   :  { %p1869_p0 = scmp.ne.s32.totalorder %s1559_s3, %s1868_s25  ;;  %p1874_p2 = scmp.lt.s32.totalorder %s1868_s25, %s1868_s25 }
  0x85   :  { %v98_v15 = vpop.permute.xlu1 %97  ;;  %v96_v16 = vpop.permute.xlu0 %95 }
  0x86   :  { %104 = vst.msk [vmem:[#allocation2 + $0x7] sm:$0xff] %vm103_vm9, %v98_v15  ;;  %p1875_p3 = por %p1874_p2, %p1873_p1 }
  0x87   :  { %102 = vst.msk [vmem:[#allocation2 - $0x1] sm:$0xfe] %vm101_vm10, %v96_v16 }
  0x88   :  { %p1876_p4 = pnand %p1875_p3, %p1869_p0 }
  0x89   :  { %v108_v17 = vpop.permute.xlu1 %107  ;;  %v106_v18 = vpop.permute.xlu0 %105 }
  0x8a   :  { %114 = vst.msk [vmem:[#allocation2 + $0x6] sm:$0xff] %vm113_vm11, %v108_v17 }
  0x8b   :  { %112 = vst.msk [vmem:[#allocation2 - $0x2] sm:$0xfc] %vm111_vm12, %v106_v18 }
  0x8d   :  { %v118_v19 = vpop.permute.xlu1 %117  ;;  %v116_v20 = vpop.permute.xlu0 %115 }
  0x8e   :  { %124 = vst.msk [vmem:[#allocation2 + $0x5] sm:$0xff] %vm123_vm13, %v118_v19 }
  0x8f   :  { %122 = vst.msk [vmem:[#allocation2 - $0x3] sm:$0xf8] %vm121_vm14, %v116_v20 }
  0x91   :  { %v132_v21 = vpop.permute.xlu1 %131  ;;  %v130_v22 = vpop.permute.xlu0 %129 }
  0x92   :  { %136 = vst.msk [vmem:[#allocation2 + $0x1a] sm:$0x3f] %vm74_vm6, %v132_v21  ;;  %vm732_vm6 = vcmask 261120  }
  0x93   :  { %135 = vst.msk [vmem:[#allocation2 + $0x12] sm:$0xff] %vm72_vm4, %v130_v22  ;;  %vm343_vm4 = vcmask 1048064  }
  0x95   :  { %v140_v23 = vpop.permute.xlu1 %139  ;;  %v138_v24 = vpop.permute.xlu0 %137  ;;  %v178_v26 = vld [vmem:[#allocation2 + $0x8] sm:$0xff] }
  0x96   :  { %v177_v25 = vld [vmem:[#allocation2] sm:$0xff]  ;;  %144 = vst.msk [vmem:[#allocation2 + $0x19] sm:$0x7f] %vm84_vm7, %v140_v23 }
  0x97   :  { %143 = vst.msk [vmem:[#allocation2 + $0x11] sm:$0xff] %vm82_vm5, %v138_v24  ;;  %1717 = vmatprep.mubr.msk.f32.mxu1 %vm55_vm0, %v177_v25 }
  0x98   :  { %1718 = vmatmul.mubr.msk.f32.vlgmr.msra.gmra.mxu1 %vm55_vm0, %v178_v26 }
  0x99   :  { %v148_v27 = vpop.permute.xlu1 %147  ;;  %v146_v28 = vpop.permute.xlu0 %145  ;;  %431 = vmatpush1.msra.mxu1 %v402_v37 }
  0x9a   :  { %152 = vst.msk [vmem:[#allocation2 + $0x18] sm:$0xff] %vm92_vm8, %v148_v27  ;;  %151 = vst.msk [vmem:[#allocation2 + $0x10] sm:$0xff] %vm92_vm8, %v146_v28  ;;  %432 = vmatprep.subr.mxu1 %v1892_v4 }
  0x9b   :  { %433 = vmatpush1.msra.mxu1 %v401_v38 }
  0x9c   :  { %434 = vmatprep.subr.mxu1 %v1892_v4 }
  0x9d   :  { %v156_v29 = vpop.permute.xlu1 %155  ;;  %v154_v30 = vpop.permute.xlu0 %153  ;;  %435 = vmatpush1.msra.mxu1 %v400_v39 }
  0x9e   :  { %160 = vst.msk [vmem:[#allocation2 + $0x17] sm:$0xff] %vm103_vm9, %v156_v29  ;;  %436 = vmatprep.subr.mxu1 %v1892_v4 }
  0x9f   :  { %159 = vst.msk [vmem:[#allocation2 + $0xf] sm:$0xfe] %vm101_vm10, %v154_v30  ;;  %437 = vmatpush1.msra.mxu1 %v399_v40  ;;  %vm1898_vm10 = vmmov 0  }
  0xa0   :  { %438 = vmatprep.subr.mxu1 %v1892_v4 }
  0xa1   :  { %v164_v31 = vpop.permute.xlu1 %163  ;;  %v162_v32 = vpop.permute.xlu0 %161  ;;  %439 = vmatpush1.msra.mxu1 %v398_v41 }
  0xa2   :  { %168 = vst.msk [vmem:[#allocation2 + $0x16] sm:$0xff] %vm113_vm11, %v164_v31  ;;  %440 = vmatprep.subr.mxu1 %v1892_v4 }
  0xa3   :  { %167 = vst.msk [vmem:[#allocation2 + $0xe] sm:$0xfc] %vm111_vm12, %v162_v32  ;;  %441 = vmatpush1.msra.mxu1 %v397_v42 }
  0xa4   :  { %442 = vmatprep.subr.mxu1 %v1892_v4 }
  0xa5   :  { %v172_v33 = vpop.permute.xlu1 %171  ;;  %v170_v34 = vpop.permute.xlu0 %169  ;;  %443 = vmatpush1.msra.mxu1 %v396_v43 }
  0xa6   :  { %176 = vst.msk [vmem:[#allocation2 + $0x15] sm:$0xff] %vm123_vm13, %v172_v33  ;;  %444 = vmatprep.subr.mxu1 %v1892_v4 }
  0xa7   :  { %175 = vst.msk [vmem:[#allocation2 + $0xd] sm:$0xf8] %vm121_vm14, %v170_v34  ;;  %445 = vmatpush1.msra.mxu1 %v395_v44  ;;  %vm1383_vm14 = vcmask 130048  }
  0xa8   :  { %446 = vmatprep.subr.mxu1 %v1892_v4 }
  0xa9   :  { %447 = vmatpush1.msra.mxu1 %v394_v45 }
  0xaa   :  { %448 = vmatprep.subr.mxu1 %v1892_v4 }
  0xab   :  { %449 = vmatpush1.msra.mxu1 %v393_v46 }
  0xac   :  { %450 = vmatprep.subr.mxu1 %v1892_v4 }
  0xad   :  { %v180_v36 = vld [vmem:[#allocation2 + $0x18] sm:$0xff]  ;;  %451 = vmatpush1.msra.mxu1 %v392_v47 }
  0xae   :  { %v179_v35 = vld [vmem:[#allocation2 + $0x10] sm:$0xff]  ;;  %452 = vmatprep.subr.mxu1 %v1892_v4  ;;  %v598_v47 = vld [vmem:[%s2748_s5 + $0x78] sm:$0xff] }
  0xaf   :  { %1720 = vmatprep.mubr.msk.f32.mxu1 %vm55_vm0, %v179_v35  ;;  %453 = vmatpush1.msra.mxu1 %v391_v48  ;;  %v597_v48 = vld [vmem:[%s2748_s5 + $0x70] sm:$0xff] }
  0xb0   :  { %1721 = vmatmul.mubr.msk.f32.gmra.mxu1 %vm55_vm0, %v180_v36  ;;  %454 = vmatprep.subr.mxu1 %v1892_v4  ;;  %vm353_vm0 = vcmask 522240  }
  0xb1   :  { %455 = vmatpush1.msra.mxu1 %v390_v49  ;;  %627 = vmatpush1.msra.mxu0 %v598_v47  ;;  %v596_v49 = vld [vmem:[%s2748_s5 + $0x68] sm:$0xff] }
  0xb2   :  { %456 = vmatprep.subr.mxu1 %v1892_v4  ;;  %628 = vmatprep.subr.mxu0 %v1892_v4 }
  0xb3   :  { %457 = vmatpush1.msra.mxu1 %v389_v50  ;;  %629 = vmatpush1.msra.mxu0 %v597_v48  ;;  %v595_v50 = vld [vmem:[%s2748_s5 + $0x60] sm:$0xff] }
  0xb4   :  { %458 = vmatprep.subr.mxu1 %v1892_v4  ;;  %630 = vmatprep.subr.mxu0 %v1892_v4 }
  0xb5   :  { %459 = vmatpush1.msra.mxu1 %v388_v51  ;;  %631 = vmatpush1.msra.mxu0 %v596_v49  ;;  %v594_v51 = vld [vmem:[%s2748_s5 + $0x58] sm:$0xff] }
  0xb6   :  { %460 = vmatprep.subr.mxu1 %v1892_v4  ;;  %632 = vmatprep.subr.mxu0 %v1892_v4 }
  0xb7   :  { %461 = vmatpush1.msra.mxu1 %v387_v52  ;;  %633 = vmatpush1.msra.mxu0 %v595_v50  ;;  %v593_v52 = vld [vmem:[%s2748_s5 + $0x50] sm:$0xff] }
  0xb8   :  { %478 = vmatprep.subr.mxu1 %v1892_v4  ;;  %634 = vmatprep.subr.mxu0 %v1892_v4 }
  0xb9   :  { %479 = vmatpush2.msra.mxu1 %v410_v53  ;;  %635 = vmatpush1.msra.mxu0 %v594_v51  ;;  %v592_v53 = vld [vmem:[%s2748_s5 + $0x48] sm:$0xff] }
  0xba   :  { %480 = vmatprep.subr.mxu1 %v1892_v4  ;;  %636 = vmatprep.subr.mxu0 %v1892_v4 }
  0xbb   :  { %481 = vmatpush2.msra.mxu1 %v409_v54  ;;  %637 = vmatpush1.msra.mxu0 %v593_v52  ;;  %v591_v54 = vld [vmem:[%s2748_s5 + $0x40] sm:$0xff] }
  0xbc   :  { %482 = vmatprep.subr.mxu1 %v1892_v4  ;;  %638 = vmatprep.subr.mxu0 %v1892_v4 }
  0xbd   :  { %483 = vmatpush2.msra.mxu1 %v408_v55  ;;  %639 = vmatpush1.msra.mxu0 %v592_v53  ;;  %v590_v55 = vld [vmem:[%s2748_s5 + $0x38] sm:$0xff]  ;;  %v719_v53 = vlaneseq }
  0xbe   :  { %484 = vmatprep.subr.mxu1 %v1892_v4  ;;  %640 = vmatprep.subr.mxu0 %v1892_v4 }
  0xbf   :  { %485 = vmatpush2.msra.mxu1 %v407_v3  ;;  %641 = vmatpush1.msra.mxu0 %v591_v54  ;;  %v602_v3 = vld [vmem:[%s2748_s5 + $0x98] sm:$0xff]  ;;  %v2350_v54 = vshrl.u32 %v719_v53, 7 }
  0xc0   :  { %486 = vmatprep.subr.mxu1 %v1892_v4  ;;  %642 = vmatprep.subr.mxu0 %v1892_v4 }
  0xc1   :  { %487 = vmatpush2.msra.mxu1 %v406_v6  ;;  %643 = vmatpush1.msra.mxu0 %v590_v55  ;;  %v600_v6 = vld [vmem:[%s2748_s5 + $0x88] sm:$0xff]  ;;  %v2352_v55 = vand.u32 127, %v719_v53 }
  0xc2   :  { %488 = vmatprep.subr.mxu1 %v1892_v4  ;;  %644 = vmatprep.subr.mxu0 %v1892_v4  ;;  %v948_v53 = vld [vmem:[%s2750_s7 + $0x88] sm:$0xff] }
  0xc3   :  { %489 = vmatpush2.msra.mxu1 %v405_v9 }
  0xc4   :  { %490 = vmatprep.subr.mxu1 %v1892_v4 }
  0xc5   :  { %491 = vmatpush2.msra.mxu1 %v404_v12 }
  0xc6   :  { %492 = vmatprep.subr.mxu1 %v1892_v4 }
  0xc7   :  { %493 = vmatpush2.msra.mxu1 %v403_v14 }
 0x158   :  { %v1719_v57 = vpop.f32.mrf.mxu1 }
 0x159   :  { %v280_v58 = vadd.f32 %v1719_v57, %v1566_v56  ;;  %v588_v57 = vld [vmem:[%s2748_s5 + $0x28] sm:$0xff] }
 0x15a   :  { %v274_v59 = vpop.f32.mrf.mxu1 }
 0x15b   :  { %v1573_v60 = vmul.f32 -1.442695, %v280_v58  ;;  %v275_v61 = vadd.f32 %v1566_v56, %v274_v59  ;;  %v587_v58 = vld [vmem:[%s2748_s5 + $0x20] sm:$0xff]  ;;  %v586_v59 = vld [vmem:[%s2748_s5 + $0x18] sm:$0xff] }
 0x15d   :  { %1851 = vpow2.f32 %v1573_v60  ;;  %v1572_v62 = vmul.f32 -1.442695, %v275_v61  ;;  %v585_v60 = vld [vmem:[%s2748_s5 + $0x10] sm:$0xff]  ;;  %v584_v61 = vld [vmem:[%s2748_s5 + $0x8] sm:$0xff] }
 0x15f   :  { %1853 = vpow2.f32 %v1572_v62  ;;  %v583_v62 = vld [vmem:[%s2748_s5] sm:$0xff] }
 0x16a   :  { %v1852_v63 = vpop.eup %1851 }
 0x16b   :  { %v306_v0 = vadd.f32 1.0, %v1852_v63  ;;  %v606_v63 = vld [vmem:[%s2748_s5 + $0xb8] sm:$0xff] }
 0x16c   :  { %v1854_v1 = vpop.eup %1853 }
 0x16d   :  { %1855 = vrcp.f32 %v306_v0  ;;  %v305_v2 = vadd.f32 1.0, %v1854_v1  ;;  %v605_v0 = vld [vmem:[%s2748_s5 + $0xb0] sm:$0xff]  ;;  %v604_v1 = vld [vmem:[%s2748_s5 + $0xa8] sm:$0xff] }
 0x16f   :  { %1857 = vrcp.f32 %v305_v2  ;;  %v603_v2 = vld [vmem:[%s2748_s5 + $0xa0] sm:$0xff] }
 0x170   :  { %v1722_v5 = vpop.f32.mrf.mxu1 }
 0x171   :  { %v290_v7 = vadd.f32 %v1722_v5, %v1566_v56  ;;  %v601_v5 = vld [vmem:[%s2748_s5 + $0x90] sm:$0xff] }
 0x172   :  { %v284_v8 = vpop.f32.mrf.mxu1 }
 0x173   :  { %v1575_v10 = vmul.f32 -1.442695, %v290_v7  ;;  %v285_v11 = vadd.f32 %v1566_v56, %v284_v8  ;;  %v589_v56 = vld [vmem:[%s2748_s5 + $0x30] sm:$0xff]  ;;  %v599_v7 = vld [vmem:[%s2748_s5 + $0x80] sm:$0xff] }
 0x174   :  { %645 = vmatpush1.msra.mxu0 %v589_v56  ;;  %v1576_v8 = vld [vmem:[%s2747_s4] ss:$0 sm:$0xff]  ;;  %v724_v56 = vmul.u32 2, %v2350_v54 }
 0x175   :  { %1859 = vpow2.f32 %v1575_v10  ;;  %v1574_v13 = vmul.f32 -1.442695, %v285_v11  ;;  %646 = vmatprep.subr.mxu0 %v1892_v4 }
 0x176   :  { %647 = vmatpush1.msra.mxu0 %v588_v57  ;;  %vm726_vm5 = vcmp.eq.s32.totalorder %v2352_v55, %v724_v56 }
 0x177   :  { %1861 = vpow2.f32 %v1574_v13  ;;  %648 = vmatprep.subr.mxu0 %v1892_v4  ;;  %v1586_v57 = vsel %vm726_vm5, 1.0, %v1892_v4 }
 0x178   :  { %649 = vmatpush1.msra.mxu0 %v587_v58  ;;  %v814_v58 = vadd.s32 1, %v724_v56  ;;  %v947_v56 = vld [vmem:[%s2750_s7 + $0x80] sm:$0xff] }
 0x179   :  { %650 = vmatprep.subr.mxu0 %v1892_v4 }
 0x17a   :  { %v2172_v15 = vpop.eup %1855  ;;  %651 = vmatpush1.msra.mxu0 %v586_v59  ;;  %vm816_vm7 = vcmp.eq.s32.totalorder %v2352_v55, %v814_v58 }
 0x17b   :  { %339 = vrot.lane.b32.xlu1 %v2172_v15, %s1897_s24  ;;  %v348_v16 = vrot.slane %v2172_v15, 1  ;;  %v330_v20 = vrot.slane %v2172_v15, 7  ;;  %652 = vmatprep.subr.mxu0 %v1892_v4  ;;  %v1590_v59 = vsel %vm816_vm7, 1.0, %v1892_v4 }
 0x17c   :  { %v2177_v17 = vpop.eup %1857  ;;  %653 = vmatpush1.msra.mxu0 %v585_v60 }
 0x17d   :  { %337 = vrot.lane.b32.xlu0 %v2177_v17, %s1897_s24  ;;  %v347_v18 = vrot.slane %v2177_v17, 1  ;;  %v329_v19 = vrot.slane %v2177_v17, 7  ;;  %354 = vst.msk [vmem:[#allocation3 + $0x18] sm:$0x7f] %vm353_vm0, %v348_v16  ;;  %654 = vmatprep.subr.mxu0 %v1892_v4 }
 0x17e   :  { %655 = vmatpush1.msra.mxu0 %v584_v61 }
 0x17f   :  { %v349_v21 = vsel %vm346_vm1, %v347_v18, %v348_v16  ;;  %v331_v22 = vsel %vm328_vm2, %v329_v19, %v330_v20  ;;  %335 = vst.msk [vmem:[#allocation3] sm:$0xfe] %vm334_vm3, %v329_v19  ;;  %656 = vmatprep.subr.mxu0 %v1892_v4 }
 0x180   :  { %352 = vst.msk [vmem:[#allocation3 + $0x8] sm:$0xff] %vm318_vm15, %v349_v21  ;;  %336 = vst.msk [vmem:[#allocation3 + $0x10] sm:$0xff] %vm318_vm15, %v331_v22  ;;  %657 = vmatpush1.msra.mxu0 %v583_v62 }
 0x181   :  { %674 = vmatprep.subr.mxu0 %v1892_v4 }
 0x182   :  { %v1860_v23 = vpop.eup %1859  ;;  %675 = vmatpush2.msra.mxu0 %v606_v63 }
 0x183   :  { %v308_v24 = vadd.f32 1.0, %v1860_v23  ;;  %676 = vmatprep.subr.mxu0 %v1892_v4 }
 0x184   :  { %v1862_v25 = vpop.eup %1861  ;;  %v382_v26 = vld [vmem:[#allocation3 + $0x18] sm:$0xff]  ;;  %677 = vmatpush2.msra.mxu0 %v605_v0 }
 0x185   :  { %1863 = vrcp.f32 %v308_v24  ;;  %v307_v27 = vadd.f32 1.0, %v1862_v25  ;;  %522 = vst.msk [vmem:[#allocation3 + $0x18] sm:$0xff] %vm318_vm15, %v1892_v4  ;;  %678 = vmatprep.subr.mxu0 %v1892_v4 }
 0x186   :  { %679 = vmatpush2.msra.mxu0 %v604_v1  ;;  %v1581_v1 = vld [vmem:[%s2749_s6] ss:$0 sm:$0xff] }
 0x187   :  { %1865 = vrcp.f32 %v307_v27  ;;  %v380_v28 = vld [vmem:[#allocation3 + $0x8] sm:$0xff]  ;;  %680 = vmatprep.subr.mxu0 %v1892_v4 }
 0x188   :  { %1577 = vmatprep.mubr.msk.f32.mxu1 %vm318_vm15, %v380_v28  ;;  %520 = vst.msk [vmem:[#allocation3 + $0x8] sm:$0xff] %vm318_vm15, %v1892_v4  ;;  %681 = vmatpush2.msra.mxu0 %v603_v2 }
 0x189   :  { %682 = vmatprep.subr.mxu0 %v1892_v4 }
 0x18a   :  { %683 = vmatpush2.msra.mxu0 %v602_v3 }
 0x18b   :  { %684 = vmatprep.subr.mxu0 %v1892_v4 }
 0x18c   :  { %685 = vmatpush2.msra.mxu0 %v601_v5  ;;  %v721_v5 = vadd.s32 8, %v2350_v54 }
 0x18d   :  { %686 = vmatprep.subr.mxu0 %v1892_v4 }
 0x18e   :  { %687 = vmatpush2.msra.mxu0 %v600_v6 }
 0x18f   :  { %688 = vmatprep.subr.mxu0 %v1892_v4 }
 0x190   :  { %689 = vmatpush2.msra.mxu0 %v599_v7 }
 0x192   :  { %v2195_v29 = vpop.eup %1863 }
 0x193   :  { %366 = vrot.lane.b32.xlu1 %v2195_v29, %s1897_s24  ;;  %v373_v30 = vrot.slane %v2195_v29, 1  ;;  %v358_v34 = vrot.slane %v2195_v29, 7 }
 0x194   :  { %v2200_v31 = vpop.eup %1865 }
 0x195   :  { %364 = vrot.lane.b32.xlu0 %v2200_v31, %s1897_s24  ;;  %v372_v32 = vrot.slane %v2200_v31, 1  ;;  %378 = vst.msk [vmem:[#allocation3 + $0x38] sm:$0x7f] %vm353_vm0, %v373_v30  ;;  %v357_v33 = vrot.slane %v2200_v31, 7 }
 0x197   :  { %v374_v35 = vsel %vm346_vm1, %v372_v32, %v373_v30  ;;  %v359_v36 = vsel %vm328_vm2, %v357_v33, %v358_v34  ;;  %362 = vst.msk [vmem:[#allocation3 + $0x20] sm:$0xfe] %vm334_vm3, %v357_v33 }
 0x198   :  { %377 = vst.msk [vmem:[#allocation3 + $0x28] sm:$0xff] %vm318_vm15, %v374_v35  ;;  %363 = vst.msk [vmem:[#allocation3 + $0x30] sm:$0xff] %vm318_vm15, %v359_v36 }
 0x19c   :  { %v386_v37 = vld [vmem:[#allocation3 + $0x38] sm:$0xff] }
 0x19d   :  { %526 = vst.msk [vmem:[#allocation3 + $0x38] sm:$0xff] %vm318_vm15, %v1892_v4 }
 0x19f   :  { %v384_v38 = vld [vmem:[#allocation3 + $0x28] sm:$0xff] }
 0x1a0   :  { %524 = vst.msk [vmem:[#allocation3 + $0x28] sm:$0xff] %vm318_vm15, %v1892_v4 }
 0x1ed   :  { %v340_v39 = vpop.permute.xlu1 %339 }
 0x1ee   :  { %345 = vst.msk [vmem:[#allocation3 + $0x10] sm:$0xff] %vm343_vm4, %v340_v39 }
 0x1ef   :  { %v338_v40 = vpop.permute.xlu0 %337 }
 0x1f0   :  { %344 = vst.msk [vmem:[#allocation3] sm:$0xff] %vm343_vm4, %v338_v40 }
 0x1f5   :  { %v381_v41 = vld [vmem:[#allocation3 + $0x10] sm:$0xff] }
 0x1f6   :  { %521 = vst [vmem:[#allocation3 + $0x10] sm:$0xff] %v1892_v4 }
 0x1f7   :  { %v379_v42 = vld [vmem:[#allocation3] sm:$0xff] }
 0x1f8   :  { %519 = vst [vmem:[#allocation3] sm:$0xff] %v1892_v4  ;;  %495 = vmatmul.mubr.f32.vlgmr.msra.gmra.mxu1 %v379_v42 }
 0x1f9   :  { %1578 = vmatprep.mubr.msk.f32.mxu1 %vm318_vm15, %v382_v26 }
 0x1fc   :  { %500 = vmatmul.mubr.f32.gmra.mxu1 %v381_v41 }
 0x1fd   :  { %1579 = vmatprep.mubr.msk.f32.mxu1 %vm318_vm15, %v384_v38 }
 0x205   :  { %v367_v43 = vpop.permute.xlu1 %366 }
 0x206   :  { %371 = vst.msk [vmem:[#allocation3 + $0x30] sm:$0xff] %vm343_vm4, %v367_v43 }
 0x207   :  { %v365_v44 = vpop.permute.xlu0 %364 }
 0x208   :  { %370 = vst.msk [vmem:[#allocation3 + $0x20] sm:$0xff] %vm343_vm4, %v365_v44 }
 0x20d   :  { %v385_v45 = vld [vmem:[#allocation3 + $0x30] sm:$0xff] }
 0x20e   :  { %525 = vst [vmem:[#allocation3 + $0x30] sm:$0xff] %v1892_v4 }
 0x20f   :  { %v383_v46 = vld [vmem:[#allocation3 + $0x20] sm:$0xff] }
 0x210   :  { %505 = vmatmul.mubr.f32.gmra.mxu1 %v383_v46  ;;  %523 = vst [vmem:[#allocation3 + $0x20] sm:$0xff] %v1892_v4 }
 0x211   :  { %1580 = vmatprep.mubr.msk.f32.mxu1 %vm318_vm15, %v386_v37 }
 0x214   :  { %510 = vmatmul.mubr.f32.gmra.mxu1 %v385_v45 }
 0x215   :  { %1731 = vmatprep.mubr.msk.f32.mxu1 %vm732_vm6, %v1586_v57 }
 0x2b8   :  { %v496_v9 = vpop.f32.mrf.mxu1 }
 0x2b9   :  { %v497_v10 = vadd.f32 %v1576_v8, %v496_v9 }
 0x2ba   :  { %v498_v11 = vpop.f32.mrf.mxu1 }
 0x2bb   :  { %v515_v12 = vmax.f32 %v497_v10, 0.0 }
 0x2bc   :  { %v501_v13 = vpop.f32.mrf.mxu1 }
 0x2bd   :  { %v529_v14 = vrot.slane %v515_v12, 7  ;;  %v502_v16 = vadd.f32 %v1576_v8, %v501_v13  ;;  %536 = vrot.lane.b32.xlu0 %v515_v12, %s1897_s24  ;;  %v544_v20 = vrot.slane %v515_v12, 1  ;;  %v725_v13 = vmul.u32 2, %v721_v5  ;;  %v1180_v5 = vld [vmem:[%s2754_s11 + $0x68] sm:$0xff] }
 0x2be   :  { %v503_v18 = vpop.f32.mrf.mxu1 }
 0x2bf   :  { %534 = vst.msk [vmem:[#allocation3] sm:$0xfe] %vm334_vm3, %v529_v14  ;;  %v516_v19 = vmax.f32 %v502_v16, 0.0  ;;  %v815_v18 = vadd.s32 1, %v725_v13  ;;  %vm727_vm8 = vcmp.eq.s32.totalorder %v2352_v55, %v725_v13  ;;  %v1176_v13 = vld [vmem:[%s2754_s11 + $0x48] sm:$0xff] }
 0x2c1   :  { %v530_v21 = vrot.slane %v516_v19, 7  ;;  %v545_v22 = vrot.slane %v516_v19, 1  ;;  %538 = vrot.lane.b32.xlu1 %v516_v19, %s1897_s24  ;;  %vm817_vm9 = vcmp.eq.s32.totalorder %v2352_v55, %v815_v18  ;;  %v1190_v18 = vld [vmem:[%s2754_s11 + $0xb8] sm:$0xff] }
 0x2c3   :  { %v546_v23 = vsel %vm346_vm1, %v544_v20, %v545_v22  ;;  %550 = vst.msk [vmem:[#allocation3 + $0x18] sm:$0x7f] %vm353_vm0, %v545_v22  ;;  %v531_v24 = vsel %vm328_vm2, %v529_v14, %v530_v21  ;;  %v1051_v22 = vld [vmem:[%s2752_s9 + $0x30] sm:$0xff] }
 0x2c4   :  { %549 = vst.msk [vmem:[#allocation3 + $0x8] sm:$0xff] %vm318_vm15, %v546_v23  ;;  %535 = vst.msk [vmem:[#allocation3 + $0x10] sm:$0xff] %vm318_vm15, %v531_v24  ;;  %v1050_v23 = vld [vmem:[%s2752_s9 + $0x28] sm:$0xff]  ;;  %v1049_v24 = vld [vmem:[%s2752_s9 + $0x20] sm:$0xff] }
 0x2ca   :  { %v578_v45 = vld [vmem:[#allocation3 + $0x18] sm:$0xff] }
 0x2cb   :  { %v576_v25 = vld [vmem:[#allocation3 + $0x8] sm:$0xff] }
 0x2cc   :  { %1582 = vmatprep.mubr.msk.f32.mxu0 %vm318_vm15, %v576_v25  ;;  %v1048_v25 = vld [vmem:[%s2752_s9 + $0x18] sm:$0xff] }
 0x2d0   :  { %v506_v26 = vpop.f32.mrf.mxu1 }
 0x2d1   :  { %v507_v27 = vadd.f32 %v1576_v8, %v506_v26  ;;  %v1046_v26 = vld [vmem:[%s2752_s9 + $0x8] sm:$0xff] }
 0x2d2   :  { %v508_v28 = vpop.f32.mrf.mxu1 }
 0x2d3   :  { %v517_v30 = vmax.f32 %v507_v27, 0.0  ;;  %v1045_v27 = vld [vmem:[%s2752_s9] sm:$0xff]  ;;  %v946_v28 = vld [vmem:[%s2750_s7 + $0x78] sm:$0xff] }
 0x2d4   :  { %v511_v32 = vpop.f32.mrf.mxu1 }
 0x2d5   :  { %v553_v33 = vrot.slane %v517_v30, 7  ;;  %v512_v34 = vadd.f32 %v1576_v8, %v511_v32  ;;  %560 = vrot.lane.b32.xlu0 %v517_v30, %s1897_s24  ;;  %v568_v37 = vrot.slane %v517_v30, 1  ;;  %v945_v30 = vld [vmem:[%s2750_s7 + $0x70] sm:$0xff]  ;;  %v2406_v32 = vld [vmem:[#allocation4] sm:$0xff] }
 0x2d6   :  { %v513_v35 = vpop.f32.mrf.mxu1 }
 0x2d7   :  { %558 = vst.msk [vmem:[#allocation3 + $0x20] sm:$0xfe] %vm334_vm3, %v553_v33  ;;  %v518_v36 = vmax.f32 %v512_v34, 0.0  ;;  %v943_v34 = vld [vmem:[%s2750_s7 + $0x60] sm:$0xff]  ;;  %v942_v35 = vld [vmem:[%s2750_s7 + $0x58] sm:$0xff] }
 0x2d9   :  { %v554_v38 = vrot.slane %v518_v36, 7  ;;  %v569_v39 = vrot.slane %v518_v36, 1  ;;  %562 = vrot.lane.b32.xlu1 %v518_v36, %s1897_s24  ;;  %v941_v36 = vld [vmem:[%s2750_s7 + $0x50] sm:$0xff] }
 0x2db   :  { %v570_v40 = vsel %vm346_vm1, %v568_v37, %v569_v39  ;;  %574 = vst.msk [vmem:[#allocation3 + $0x38] sm:$0x7f] %vm353_vm0, %v569_v39  ;;  %v555_v41 = vsel %vm328_vm2, %v553_v33, %v554_v38  ;;  %v944_v33 = vld [vmem:[%s2750_s7 + $0x68] sm:$0xff]  ;;  %v939_v38 = vld [vmem:[%s2750_s7 + $0x40] sm:$0xff]  ;;  %v938_v39 = vld [vmem:[%s2750_s7 + $0x38] sm:$0xff] }
 0x2dc   :  { %573 = vst.msk [vmem:[#allocation3 + $0x28] sm:$0xff] %vm318_vm15, %v570_v40  ;;  %559 = vst.msk [vmem:[#allocation3 + $0x30] sm:$0xff] %vm318_vm15, %v555_v41  ;;  %v940_v37 = vld [vmem:[%s2750_s7 + $0x48] sm:$0xff]  ;;  %v937_v40 = vld [vmem:[%s2750_s7 + $0x30] sm:$0xff] }
 0x2dd   :  { %v936_v41 = vld [vmem:[%s2750_s7 + $0x28] sm:$0xff] }
 0x2e2   :  { %v582_v51 = vld [vmem:[#allocation3 + $0x38] sm:$0xff] }
 0x2e3   :  { %v580_v47 = vld [vmem:[#allocation3 + $0x28] sm:$0xff] }
 0x32f   :  { %v537_v42 = vpop.permute.xlu0 %536 }
 0x330   :  { %542 = vst.msk [vmem:[#allocation3] sm:$0xff] %vm343_vm4, %v537_v42  ;;  %v935_v42 = vld [vmem:[%s2750_s7 + $0x20] sm:$0xff] }
 0x333   :  { %v539_v43 = vpop.permute.xlu1 %538 }
 0x334   :  { %543 = vst.msk [vmem:[#allocation3 + $0x10] sm:$0xff] %vm343_vm4, %v539_v43  ;;  %v934_v43 = vld [vmem:[%s2750_s7 + $0x18] sm:$0xff] }
 0x337   :  { %v575_v44 = vld [vmem:[#allocation3] sm:$0xff] }
 0x338   :  { %691 = vmatmul.mubr.f32.vlgmr.msra.gmra.mxu0 %v575_v44  ;;  %v933_v44 = vld [vmem:[%s2750_s7 + $0x10] sm:$0xff] }
 0x339   :  { %1583 = vmatprep.mubr.msk.f32.mxu0 %vm318_vm15, %v578_v45  ;;  %v932_v45 = vld [vmem:[%s2750_s7 + $0x8] sm:$0xff] }
 0x33b   :  { %v577_v46 = vld [vmem:[#allocation3 + $0x10] sm:$0xff] }
 0x33c   :  { %696 = vmatmul.mubr.f32.gmra.mxu0 %v577_v46  ;;  %v931_v46 = vld [vmem:[%s2750_s7] sm:$0xff] }
 0x33d   :  { %1584 = vmatprep.mubr.msk.f32.mxu0 %vm318_vm15, %v580_v47  ;;  %v954_v47 = vld [vmem:[%s2750_s7 + $0xb8] sm:$0xff] }
 0x347   :  { %v561_v48 = vpop.permute.xlu0 %560 }
 0x348   :  { %566 = vst.msk [vmem:[#allocation3 + $0x20] sm:$0xff] %vm343_vm4, %v561_v48  ;;  %v953_v48 = vld [vmem:[%s2750_s7 + $0xb0] sm:$0xff] }
 0x34b   :  { %v563_v49 = vpop.permute.xlu1 %562 }
 0x34c   :  { %567 = vst.msk [vmem:[#allocation3 + $0x30] sm:$0xff] %vm343_vm4, %v563_v49  ;;  %v952_v49 = vld [vmem:[%s2750_s7 + $0xa8] sm:$0xff] }
 0x34f   :  { %v579_v50 = vld [vmem:[#allocation3 + $0x20] sm:$0xff] }
 0x350   :  { %701 = vmatmul.mubr.f32.gmra.mxu0 %v579_v50  ;;  %v951_v50 = vld [vmem:[%s2750_s7 + $0xa0] sm:$0xff] }
 0x351   :  { %1585 = vmatprep.mubr.msk.f32.mxu0 %vm318_vm15, %v582_v51  ;;  %v950_v51 = vld [vmem:[%s2750_s7 + $0x98] sm:$0xff] }
 0x353   :  { %v581_v52 = vld [vmem:[#allocation3 + $0x30] sm:$0xff] }
 0x354   :  { %706 = vmatmul.mubr.f32.gmra.mxu0 %v581_v52  ;;  %v949_v52 = vld [vmem:[%s2750_s7 + $0x90] sm:$0xff] }
 0x355   :  { %1742 = vmatprep.mubr.msk.f32.mxu0 %vm732_vm6, %v1590_v59 }
 0x3f8   :  { %v692_v60 = vpop.f32.mrf.mxu0 }
 0x3f9   :  { %v693_v10 = vadd.f32 %v1581_v1, %v692_v60 }
 0x3fa   :  { %v694_v61 = vpop.f32.mrf.mxu0 }
 0x3fb   :  { %v711_v19 = vadd.f32 %v2177_v17, %v693_v10  ;;  %v1591_v17 = vsel %vm817_vm9, 1.0, %v1892_v4  ;;  %v1193_v10 = vld [vmem:[%s2754_s11 + $0xd0] sm:$0xff] }
 0x3fc   :  { %v697_v62 = vpop.f32.mrf.mxu0 }
 0x3fd   :  { %v698_v7 = vadd.f32 %v1581_v1, %v697_v62  ;;  %v1198_v62 = vld [vmem:[%s2754_s11 + $0xf8] sm:$0xff] }
 0x3fe   :  { %v699_v63 = vpop.f32.mrf.mxu0 }
 0x3ff   :  { %v712_v14 = vadd.f32 %v2172_v15, %v698_v7  ;;  %v1587_v15 = vsel %vm727_vm8, 1.0, %v1892_v4  ;;  %v1182_v63 = vld [vmem:[%s2754_s11 + $0x78] sm:$0xff]  ;;  %v1179_v7 = vld [vmem:[%s2754_s11 + $0x60] sm:$0xff] }
 0x401   :  { %v716_v21 = vmax.f32 %v712_v14, 0.0  ;;  %v1191_v14 = vld [vmem:[%s2754_s11 + $0xc0] sm:$0xff] }
 0x410   :  { %v702_v0 = vpop.f32.mrf.mxu0 }
 0x411   :  { %v703_v3 = vadd.f32 %v1581_v1, %v702_v0  ;;  %v1197_v0 = vld [vmem:[%s2754_s11 + $0xf0] sm:$0xff] }
 0x412   :  { %v704_v2 = vpop.f32.mrf.mxu0 }
 0x413   :  { %v713_v11 = vadd.f32 %v2200_v31, %v703_v3  ;;  %v1052_v31 = vld [vmem:[%s2752_s9 + $0x38] sm:$0xff]  ;;  %v1196_v3 = vld [vmem:[%s2754_s11 + $0xe8] sm:$0xff] }
 0x414   :  { %v707_v6 = vpop.f32.mrf.mxu0  ;;  %v1214_v2 = vld [vmem:[%s2754_s11 + $0x178] sm:$0xff] }
 0x415   :  { %v708_v8 = vadd.f32 %v1581_v1, %v707_v6  ;;  %v717_v20 = vmax.f32 %v713_v11, 0.0  ;;  %v1181_v1 = vld [vmem:[%s2754_s11 + $0x70] sm:$0xff]  ;;  %v1195_v6 = vld [vmem:[%s2754_s11 + $0xe0] sm:$0xff] }
 0x416   :  { %v709_v9 = vpop.f32.mrf.mxu0  ;;  %v1177_v11 = vld [vmem:[%s2754_s11 + $0x50] sm:$0xff] }
 0x417   :  { %v714_v12 = vadd.f32 %v2195_v29, %v708_v8  ;;  %v715_v29 = vmax.f32 %v711_v19, 0.0  ;;  %v1194_v8 = vld [vmem:[%s2754_s11 + $0xd8] sm:$0xff] }
 0x418   :  { %v1178_v9 = vld [vmem:[%s2754_s11 + $0x58] sm:$0xff] }
 0x419   :  { %v718_v16 = vmax.f32 %v714_v12, 0.0  ;;  %v1192_v12 = vld [vmem:[%s2754_s11 + $0xc8] sm:$0xff] }
 0x41b   :  { %1723 = vmatprep.subr.mxu1 %v718_v16  ;;  %1734 = vmatprep.subr.mxu0 %v718_v16 }
 0x41c   :  { %1724 = vmatpush3.msra.mxu1 %v718_v16  ;;  %1735 = vmatpush3.msra.mxu0 %v718_v16  ;;  %v1175_v16 = vld [vmem:[%s2754_s11 + $0x40] sm:$0xff] }
 0x41d   :  { %1725 = vmatprep.subr.mxu1 %v717_v20  ;;  %1736 = vmatprep.subr.mxu0 %v717_v20 }
 0x41e   :  { %1726 = vmatpush3.msra.mxu1 %v717_v20  ;;  %1737 = vmatpush3.msra.mxu0 %v717_v20 }
 0x41f   :  { %1727 = vmatprep.subr.mxu1 %v716_v21  ;;  %1738 = vmatprep.subr.mxu0 %v716_v21 }
 0x420   :  { %1728 = vmatpush3.msra.mxu1 %v716_v21  ;;  %1739 = vmatpush3.msra.mxu0 %v716_v21 }
 0x421   :  { %1729 = vmatprep.subr.mxu1 %v715_v29  ;;  %1740 = vmatprep.subr.mxu0 %v715_v29 }
 0x422   :  { %1730 = vmatpush3.msra.mxu1 %v715_v29  ;;  %1741 = vmatpush3.msra.mxu0 %v715_v29 }
 0x423   :  { %1732 = vmatmul.mubr.msk.f32.vlgmr.msra.gmra.mxu1 %vm732_vm6, %v1587_v15  ;;  %1743 = vmatmul.mubr.msk.f32.vlgmr.msra.gmra.mxu0 %vm732_vm6, %v1591_v17  ;;  %v1213_v17 = vld [vmem:[%s2754_s11 + $0x170] sm:$0xff] }
 0x424   :  { %1745 = vmatprep.subr.mxu0 %v1052_v31  ;;  %968 = vmatprep.subr.mxu1 %v1892_v4  ;;  %v1047_v4 = vld [vmem:[%s2752_s9 + $0x10] sm:$0xff] }
 0x425   :  { %1746 = vmatpush3.msra.mxu0 %v1052_v31  ;;  %969 = vmatpush1.msra.mxu1 %v946_v28  ;;  %v1189_v28 = vld [vmem:[%s2754_s11 + $0xb0] sm:$0xff] }
 0x426   :  { %1747 = vmatprep.subr.mxu0 %v1051_v22  ;;  %970 = vmatprep.subr.mxu1 %v2406_v32 }
 0x427   :  { %1748 = vmatpush3.msra.mxu0 %v1051_v22  ;;  %971 = vmatpush1.msra.mxu1 %v945_v30  ;;  %v1212_v22 = vld [vmem:[%s2754_s11 + $0x168] sm:$0xff]  ;;  %v1207_v30 = vld [vmem:[%s2754_s11 + $0x140] sm:$0xff] }
 0x428   :  { %1749 = vmatprep.subr.mxu0 %v1050_v23  ;;  %972 = vmatprep.subr.mxu1 %v2406_v32 }
 0x429   :  { %1750 = vmatpush3.msra.mxu0 %v1050_v23  ;;  %973 = vmatpush1.msra.mxu1 %v944_v33  ;;  %v1173_v33 = vld [vmem:[%s2754_s11 + $0x30] sm:$0xff] }
 0x42a   :  { %1751 = vmatprep.subr.mxu0 %v1049_v24  ;;  %974 = vmatprep.subr.mxu1 %v2406_v32 }
 0x42b   :  { %1752 = vmatpush3.msra.mxu0 %v1049_v24  ;;  %975 = vmatpush1.msra.mxu1 %v943_v34  ;;  %v1211_v24 = vld [vmem:[%s2754_s11 + $0x160] sm:$0xff]  ;;  %v1188_v34 = vld [vmem:[%s2754_s11 + $0xa8] sm:$0xff] }
 0x42c   :  { %1753 = vmatprep.subr.mxu0 %v1048_v25  ;;  %976 = vmatprep.subr.mxu1 %v2406_v32 }
 0x42d   :  { %1754 = vmatpush3.msra.mxu0 %v1048_v25  ;;  %977 = vmatpush1.msra.mxu1 %v942_v35  ;;  %v1210_v25 = vld [vmem:[%s2754_s11 + $0x158] sm:$0xff] }
 0x42e   :  { %1755 = vmatprep.subr.mxu0 %v1047_v4  ;;  %978 = vmatprep.subr.mxu1 %v2406_v32  ;;  %v1206_v35 = vld [vmem:[%s2754_s11 + $0x138] sm:$0xff] }
 0x42f   :  { %1756 = vmatpush3.msra.mxu0 %v1047_v4  ;;  %979 = vmatpush1.msra.mxu1 %v941_v36  ;;  %v1209_v4 = vld [vmem:[%s2754_s11 + $0x150] sm:$0xff]  ;;  %v1172_v36 = vld [vmem:[%s2754_s11 + $0x28] sm:$0xff] }
 0x430   :  { %1757 = vmatprep.subr.mxu0 %v1046_v26  ;;  %980 = vmatprep.subr.mxu1 %v2406_v32 }
 0x431   :  { %1758 = vmatpush3.msra.mxu0 %v1046_v26  ;;  %981 = vmatpush1.msra.mxu1 %v940_v37  ;;  %v1208_v26 = vld [vmem:[%s2754_s11 + $0x148] sm:$0xff]  ;;  %v1187_v37 = vld [vmem:[%s2754_s11 + $0xa0] sm:$0xff] }
 0x432   :  { %1759 = vmatprep.subr.mxu0 %v1045_v27  ;;  %982 = vmatprep.subr.mxu1 %v2406_v32 }
 0x433   :  { %1760 = vmatpush3.msra.mxu0 %v1045_v27  ;;  %983 = vmatpush1.msra.mxu1 %v939_v38  ;;  %v1174_v27 = vld [vmem:[%s2754_s11 + $0x38] sm:$0xff]  ;;  %v1205_v38 = vld [vmem:[%s2754_s11 + $0x130] sm:$0xff] }
 0x434   :  { %984 = vmatprep.subr.mxu1 %v2406_v32  ;;  %1633 = vmatprep.subr.mxu0 %v1198_v62 }
 0x435   :  { %985 = vmatpush1.msra.mxu1 %v938_v39  ;;  %v1171_v39 = vld [vmem:[%s2754_s11 + $0x20] sm:$0xff] }
 0x436   :  { %986 = vmatprep.subr.mxu1 %v2406_v32 }
 0x437   :  { %987 = vmatpush1.msra.mxu1 %v937_v40  ;;  %v1186_v40 = vld [vmem:[%s2754_s11 + $0x98] sm:$0xff] }
 0x438   :  { %988 = vmatprep.subr.mxu1 %v2406_v32 }
 0x439   :  { %989 = vmatpush1.msra.mxu1 %v936_v41  ;;  %v1204_v41 = vld [vmem:[%s2754_s11 + $0x128] sm:$0xff] }
 0x43a   :  { %990 = vmatprep.subr.mxu1 %v2406_v32 }
 0x43b   :  { %991 = vmatpush1.msra.mxu1 %v935_v42  ;;  %v1170_v42 = vld [vmem:[%s2754_s11 + $0x18] sm:$0xff] }
 0x43c   :  { %992 = vmatprep.subr.mxu1 %v2406_v32 }
 0x43d   :  { %993 = vmatpush1.msra.mxu1 %v934_v43  ;;  %v1185_v43 = vld [vmem:[%s2754_s11 + $0x90] sm:$0xff] }
 0x43e   :  { %994 = vmatprep.subr.mxu1 %v2406_v32 }
 0x43f   :  { %995 = vmatpush1.msra.mxu1 %v933_v44  ;;  %v1203_v44 = vld [vmem:[%s2754_s11 + $0x120] sm:$0xff] }
 0x440   :  { %996 = vmatprep.subr.mxu1 %v2406_v32 }
 0x441   :  { %997 = vmatpush1.msra.mxu1 %v932_v45  ;;  %v1169_v45 = vld [vmem:[%s2754_s11 + $0x10] sm:$0xff] }
 0x442   :  { %998 = vmatprep.subr.mxu1 %v2406_v32 }
 0x443   :  { %999 = vmatpush1.msra.mxu1 %v931_v46  ;;  %v1184_v46 = vld [vmem:[%s2754_s11 + $0x88] sm:$0xff] }
 0x444   :  { %1016 = vmatprep.subr.mxu1 %v2406_v32 }
 0x445   :  { %1017 = vmatpush2.msra.mxu1 %v954_v47  ;;  %v1202_v47 = vld [vmem:[%s2754_s11 + $0x118] sm:$0xff] }
 0x446   :  { %1018 = vmatprep.subr.mxu1 %v2406_v32 }
 0x447   :  { %1019 = vmatpush2.msra.mxu1 %v953_v48  ;;  %v1168_v48 = vld [vmem:[%s2754_s11 + $0x8] sm:$0xff] }
 0x448   :  { %1020 = vmatprep.subr.mxu1 %v2406_v32 }
 0x449   :  { %1021 = vmatpush2.msra.mxu1 %v952_v49  ;;  %v1183_v49 = vld [vmem:[%s2754_s11 + $0x80] sm:$0xff] }
 0x44a   :  { %1022 = vmatprep.subr.mxu1 %v2406_v32 }
 0x44b   :  { %1023 = vmatpush2.msra.mxu1 %v951_v50  ;;  %v1201_v50 = vld [vmem:[%s2754_s11 + $0x110] sm:$0xff] }
 0x44c   :  { %1024 = vmatprep.subr.mxu1 %v2406_v32 }
 0x44d   :  { %1025 = vmatpush2.msra.mxu1 %v950_v51  ;;  %v1167_v51 = vld [vmem:[%s2754_s11] sm:$0xff] }
 0x44e   :  { %1026 = vmatprep.subr.mxu1 %v2406_v32 }
 0x44f   :  { %1027 = vmatpush2.msra.mxu1 %v949_v52  ;;  %v1200_v52 = vld [vmem:[%s2754_s11 + $0x108] sm:$0xff] }
 0x450   :  { %1028 = vmatprep.subr.mxu1 %v2406_v32 }
 0x451   :  { %1029 = vmatpush2.msra.mxu1 %v948_v53  ;;  %v1199_v53 = vld [vmem:[%s2754_s11 + $0x100] sm:$0xff] }
 0x452   :  { %1030 = vmatprep.subr.mxu1 %v2406_v32 }
 0x453   :  { %1031 = vmatpush2.msra.mxu1 %v947_v56  ;;  %v1594_v56 = vld [vmem:[%s2751_s8] ss:$0 sm:$0xff] }
 0x454   :  { %1764 = vmatprep.subr.mxu1 %v1214_v2 }
 0x4e3   :  { %v1733_v57 = vpop.f32.mrf.mxu1  ;;  %v1744_v58 = vpop.f32.mrf.mxu0 }
 0x4e4   :  { %911 = vrot.lane.b32.xlu1 %v1733_v57, %s1897_s24  ;;  %918 = vst.msk [vmem:[#allocation4 + $0x18] sm:$0xff] %vm318_vm15, %v1744_v58  ;;  %v924_v19 = vrot.slane %v1744_v58, 7 }
 0x4e5   :  { %v805_v59 = vpop.f32.mrf.mxu1  ;;  %v894_v60 = vpop.f32.mrf.mxu0 }
 0x4e6   :  { %909 = vrot.lane.b32.xlu0 %v805_v59, %s1897_s24  ;;  %1761 = vmatprep.mubr.msk.f32.mxu0 %vm318_vm15, %v805_v59  ;;  %917 = vst.msk [vmem:[#allocation4 + $0x8] sm:$0xff] %vm318_vm15, %v894_v60  ;;  %v920_v21 = vrot.slane %v894_v60, 7 }
 0x4e7   :  { %1762 = vmatmul.mubr.msk.f32.vlgmr.msra.gmra.mxu0 %vm318_vm15, %v1733_v57 }
 0x4e8   :  { %1634 = vmatpush3.msra.mxu0 %v1182_v63 }
 0x4e9   :  { %1635 = vmatprep.subr.mxu0 %v1197_v0 }
 0x4ea   :  { %1636 = vmatpush3.msra.mxu0 %v1181_v1 }
 0x4eb   :  { %1637 = vmatprep.subr.mxu0 %v1196_v3  ;;  %v930_v31 = vld [vmem:[#allocation4 + $0x18] sm:$0xff] }
 0x4ec   :  { %1638 = vmatpush3.msra.mxu0 %v1180_v5 }
 0x4ed   :  { %v928_v61 = vld [vmem:[#allocation4 + $0x8] sm:$0xff]  ;;  %1639 = vmatprep.subr.mxu0 %v1195_v6 }
 0x4ee   :  { %1595 = vmatprep.mubr.msk.f32.mxu1 %vm318_vm15, %v928_v61  ;;  %1640 = vmatpush3.msra.mxu0 %v1179_v7 }
 0x4ef   :  { %1641 = vmatprep.subr.mxu0 %v1194_v8 }
 0x4f0   :  { %1642 = vmatpush3.msra.mxu0 %v1178_v9 }
 0x4f1   :  { %1643 = vmatprep.subr.mxu0 %v1193_v10 }
 0x4f2   :  { %1644 = vmatpush3.msra.mxu0 %v1177_v11 }
 0x4f3   :  { %1645 = vmatprep.subr.mxu0 %v1192_v12 }
 0x4f4   :  { %1646 = vmatpush3.msra.mxu0 %v1176_v13 }
 0x4f5   :  { %1647 = vmatprep.subr.mxu0 %v1191_v14  ;;  %v1600_v14 = vld [vmem:[%s2755_s12] ss:$0 sm:$0xff] }
 0x4f6   :  { %1648 = vmatpush3.msra.mxu0 %v1175_v16 }
 0x4f7   :  { %1649 = vmatprep.subr.mxu0 %v1190_v18  ;;  %v1378_v18 = vadd.s32 1, %v2350_v54 }
 0x4f8   :  { %1650 = vmatpush3.msra.mxu0 %v1174_v27 }
 0x4f9   :  { %1651 = vmatprep.subr.mxu0 %v1189_v28 }
 0x4fa   :  { %1652 = vmatpush3.msra.mxu0 %v1173_v33 }
 0x4fb   :  { %1653 = vmatprep.subr.mxu0 %v1188_v34 }
 0x4fc   :  { %1654 = vmatpush3.msra.mxu0 %v1172_v36  ;;  %v1470_v36 = vld [vmem:[%s2756_s13 + $0x68] sm:$0xff] }
 0x4fd   :  { %1655 = vmatprep.subr.mxu0 %v1187_v37  ;;  %v1469_v37 = vld [vmem:[%s2756_s13 + $0x60] sm:$0xff] }
 0x4fe   :  { %1656 = vmatpush3.msra.mxu0 %v1171_v39  ;;  %v1467_v39 = vld [vmem:[%s2756_s13 + $0x50] sm:$0xff] }
 0x4ff   :  { %1657 = vmatprep.subr.mxu0 %v1186_v40  ;;  %v1466_v40 = vld [vmem:[%s2756_s13 + $0x48] sm:$0xff] }
 0x500   :  { %1658 = vmatpush3.msra.mxu0 %v1170_v42  ;;  %v1464_v42 = vld [vmem:[%s2756_s13 + $0x38] sm:$0xff] }
 0x501   :  { %1659 = vmatprep.subr.mxu0 %v1185_v43  ;;  %v1463_v43 = vld [vmem:[%s2756_s13 + $0x30] sm:$0xff] }
 0x502   :  { %1660 = vmatpush3.msra.mxu0 %v1169_v45  ;;  %v1461_v45 = vld [vmem:[%s2756_s13 + $0x20] sm:$0xff] }
 0x503   :  { %1661 = vmatprep.subr.mxu0 %v1184_v46  ;;  %v1460_v46 = vld [vmem:[%s2756_s13 + $0x18] sm:$0xff] }
 0x504   :  { %1662 = vmatpush3.msra.mxu0 %v1168_v48  ;;  %v1458_v48 = vld [vmem:[%s2756_s13 + $0x8] sm:$0xff] }
 0x505   :  { %1663 = vmatprep.subr.mxu0 %v1183_v49  ;;  %v1457_v49 = vld [vmem:[%s2756_s13] sm:$0xff] }
 0x506   :  { %1664 = vmatpush3.msra.mxu0 %v1167_v51 }
 0x507   :  { %1799 = vmatprep.subr.mxu0 %v2406_v32 }
 0x556   :  { %v912_v20 = vpop.permute.xlu1 %911 }
 0x557   :  { %916 = vst.msk [vmem:[#allocation4 + $0x10] sm:$0xff] %vm343_vm4, %v912_v20 }
 0x558   :  { %v910_v29 = vpop.permute.xlu0 %909  ;;  %926 = vst.msk [vmem:[#allocation4 + $0x10] sm:$0xfe] %vm334_vm3, %v924_v19 }
 0x559   :  { %915 = vst.msk [vmem:[#allocation4] sm:$0xff] %vm343_vm4, %v910_v29 }
 0x55a   :  { %922 = vst.msk [vmem:[#allocation4] sm:$0xfe] %vm334_vm3, %v920_v21 }
 0x55f   :  { %v929_v23 = vld [vmem:[#allocation4 + $0x10] sm:$0xff] }
 0x561   :  { %v927_v15 = vld [vmem:[#allocation4] sm:$0xff] }
 0x562   :  { %1033 = vmatmul.mubr.f32.vlgmr.msra.gmra.mxu1 %v927_v15 }
 0x563   :  { %1596 = vmatprep.mubr.msk.f32.mxu1 %vm318_vm15, %v930_v31  ;;  %1765 = vmatpush3.msra.mxu1 %v1214_v2  ;;  %vm1550_vm15 = vcmask 74752  }
 0x564   :  { %1766 = vmatprep.subr.mxu1 %v1213_v17 }
 0x565   :  { %1767 = vmatpush3.msra.mxu1 %v1213_v17  ;;  %v1597_v17 = vld [vmem:[%s2753_s10] ss:$0 sm:$0xff] }
 0x566   :  { %1038 = vmatmul.mubr.f32.gmra.mxu1 %v929_v23  ;;  %1768 = vmatprep.subr.mxu1 %v1212_v22  ;;  %v1379_v23 = vmul.u32 8, %v1378_v18 }
 0x567   :  { %1769 = vmatpush3.msra.mxu1 %v1212_v22  ;;  %v1376_v22 = vmul.u32 8, %v2350_v54  ;;  %v1472_v54 = vld [vmem:[%s2756_s13 + $0x78] sm:$0xff] }
 0x568   :  { %1770 = vmatprep.subr.mxu1 %v1211_v24  ;;  %vm1380_vm12 = vcmp.lt.s32.totalorder %v2352_v55, %v1379_v23 }
 0x569   :  { %1771 = vmatpush3.msra.mxu1 %v1211_v24  ;;  %vm1377_vm11 = vcmp.ge.s32.totalorder %v2352_v55, %v1376_v22  ;;  %v1471_v55 = vld [vmem:[%s2756_s13 + $0x70] sm:$0xff] }
 0x56a   :  { %1772 = vmatprep.subr.mxu1 %v1210_v25  ;;  %vm1381_vm13 = vmand %vm1377_vm11, %vm1380_vm12 }
 0x56b   :  { %1773 = vmatpush3.msra.mxu1 %v1210_v25 }
 0x56c   :  { %1774 = vmatprep.subr.mxu1 %v1209_v4 }
 0x56d   :  { %1775 = vmatpush3.msra.mxu1 %v1209_v4 }
 0x56e   :  { %1776 = vmatprep.subr.mxu1 %v1208_v26 }
 0x56f   :  { %1777 = vmatpush3.msra.mxu1 %v1208_v26 }
 0x570   :  { %1778 = vmatprep.subr.mxu1 %v1207_v30 }
 0x571   :  { %1779 = vmatpush3.msra.mxu1 %v1207_v30 }
 0x572   :  { %1780 = vmatprep.subr.mxu1 %v1206_v35 }
 0x573   :  { %1781 = vmatpush3.msra.mxu1 %v1206_v35  ;;  %v1382_v35 = vsel %vm1381_vm13, 0.125, %v2406_v32 }
 0x574   :  { %1782 = vmatprep.subr.mxu1 %v1205_v38 }
 0x575   :  { %1783 = vmatpush3.msra.mxu1 %v1205_v38  ;;  %v1468_v38 = vld [vmem:[%s2756_s13 + $0x58] sm:$0xff] }
 0x576   :  { %1784 = vmatprep.subr.mxu1 %v1204_v41 }
 0x577   :  { %1785 = vmatpush3.msra.mxu1 %v1204_v41  ;;  %v1465_v41 = vld [vmem:[%s2756_s13 + $0x40] sm:$0xff] }
 0x578   :  { %1786 = vmatprep.subr.mxu1 %v1203_v44 }
 0x579   :  { %1787 = vmatpush3.msra.mxu1 %v1203_v44  ;;  %v1462_v44 = vld [vmem:[%s2756_s13 + $0x28] sm:$0xff] }
 0x57a   :  { %1788 = vmatprep.subr.mxu1 %v1202_v47 }
 0x57b   :  { %1789 = vmatpush3.msra.mxu1 %v1202_v47  ;;  %v1459_v47 = vld [vmem:[%s2756_s13 + $0x10] sm:$0xff] }
 0x57c   :  { %1790 = vmatprep.subr.mxu1 %v1201_v50 }
 0x57d   :  { %1791 = vmatpush3.msra.mxu1 %v1201_v50 }
 0x57e   :  { %1792 = vmatprep.subr.mxu1 %v1200_v52 }
 0x57f   :  { %1793 = vmatpush3.msra.mxu1 %v1200_v52  ;;  %v1602_v52 = vld [vmem:[%s2757_s14] ss:$0 sm:$0xff] }
 0x580   :  { %1794 = vmatprep.subr.mxu1 %v1199_v53 }
 0x581   :  { %1795 = vmatpush3.msra.mxu1 %v1199_v53 }
 0x5a7   :  { %v1763_v10 = vpop.f32.mrf.mxu0 }
 0x5a8   :  { %v1136_v4 = vadd.f32 %v1763_v10, %v1597_v17 }
 0x5a9   :  { %v1130_v11 = vpop.f32.mrf.mxu0 }
 0x5aa   :  { %v1131_v26 = vadd.f32 %v1597_v17, %v1130_v11 }
 0x622   :  { %v1034_v57 = vpop.f32.mrf.mxu1 }
 0x623   :  { %v1035_v58 = vadd.f32 %v1594_v56, %v1034_v57 }
 0x624   :  { %v1036_v59 = vpop.f32.mrf.mxu1 }
 0x625   :  { %v1043_v60 = vmax.f32 %v1035_v58, 0.0 }
 0x626   :  { %v1039_v61 = vpop.f32.mrf.mxu1 }
 0x627   :  { %v1146_v62 = vrot.slane %v1043_v60, 7  ;;  %v1150_v63 = vrot.slane %v1043_v60, 1  ;;  %v1040_v0 = vadd.f32 %v1594_v56, %v1039_v61  ;;  %1286 = vmatprep.mubr.f32.mxu0 %v1043_v60 }
 0x628   :  { %v1041_v1 = vpop.f32.mrf.mxu1 }
 0x629   :  { %1148 = vst [vmem:[#allocation5 + $0x28] sm:$0xfe] %v1146_v62  ;;  %1152 = vst [vmem:[#allocation5 + $0x8] sm:$0x7f] %v1150_v63  ;;  %v1044_v2 = vmax.f32 %v1040_v0, 0.0 }
 0x62b   :  { %v1154_v3 = vrot.slane %v1044_v2, 7  ;;  %v1158_v5 = vrot.slane %v1044_v2, 1 }
 0x62d   :  { %1156 = vst [vmem:[#allocation5] sm:$0xfe] %v1154_v3  ;;  %1160 = vst [vmem:[#allocation5 + $0x20] sm:$0x7f] %v1158_v5 }
 0x630   :  { %v1161_v6 = vld [vmem:[#allocation5 + $0x28] sm:$0xff] }
 0x631   :  { %v1163_v7 = vld [vmem:[#allocation5 + $0x8] sm:$0xff]  ;;  %1287 = vmatmul.mubr.f32.vlgmr.msra.gmra.mxu0 %v1161_v6 }
 0x632   :  { %1796 = vmatprep.mubr.f32.mxu1 %v1163_v7  ;;  %1291 = vmatprep.mubr.f32.mxu0 %v1044_v2 }
 0x634   :  { %v1164_v8 = vld [vmem:[#allocation5] sm:$0xff] }
 0x635   :  { %v1166_v9 = vld [vmem:[#allocation5 + $0x20] sm:$0xff]  ;;  %1292 = vmatmul.mubr.f32.gmra.mxu0 %v1164_v8 }
 0x636   :  { %1797 = vmatmul.mubr.f32.vlgmr.msra.gmra.mxu1 %v1166_v9  ;;  %1803 = vmatprep.mubr.msk.f32.mxu0 %vm1898_vm10, %v2406_v32 }
 0x6f1   :  { %v1665_v12 = vpop.f32.mrf.mxu0 }
 0x6f3   :  { %v1666_v13 = vpop.f32.mrf.mxu0 }
 0x6f4   :  { %v1667_v16 = vadd.f32 %v1666_v13, %v1665_v12 }
 0x6f5   :  { %v1668_v19 = vpop.f32.mrf.mxu0 }
 0x6f6   :  { %v1798_v20 = vpop.f32.mrf.mxu1  ;;  %v1289_v21 = vadd.f32 %v1667_v16, %v1600_v14 }
 0x6f7   :  { %v1669_v29 = vpop.f32.mrf.mxu0 }
 0x6f8   :  { %v1363_v15 = vpop.f32.mrf.mxu1  ;;  %v1670_v31 = vadd.f32 %v1669_v29, %v1668_v19 }
 0x6f9   :  { %v1364_v25 = vadd.f32 %v1363_v15, %v1289_v21 }
 0x6fa   :  { %v1294_v24 = vadd.f32 %v1670_v31, %v1600_v14 }
 0x6fb   :  { %v1372_v30 = vadd.f32 %v1364_v25, %v1131_v26 }
 0x6fc   :  { %v1369_v27 = vadd.f32 %v1798_v20, %v1294_v24 }
 0x6fd   :  { %v1374_v34 = vmax.f32 %v1372_v30, 0.0 }
 0x6fe   :  { %v1373_v28 = vadd.f32 %v1369_v27, %v1136_v4 }
 0x700   :  { %v1375_v33 = vmax.f32 %v1373_v28, 0.0 }
 0x702   :  { %1800 = vmatpush3.msra.mxu0 %v1375_v33 }
 0x703   :  { %1801 = vmatprep.subr.mxu0 %v2406_v32 }
 0x704   :  { %1802 = vmatpush3.msra.mxu0 %v1374_v34 }
 0x705   :  { %1804 = vmatmul.mubr.msk.f32.vlgmr.msra.gmra.mxu0 %vm1383_vm14, %v1382_v35  ;;  %1806 = vmatprep.subr.mxu0 %v2406_v32 }
 0x706   :  { %1807 = vmatpush3.msra.mxu0 %v1472_v54  ;;  %1838 = vmatprep.mubr.msk.f32.mxu0 %vm1898_vm10, %v2406_v32 }
 0x707   :  { %1808 = vmatprep.subr.mxu0 %v2406_v32 }
 0x708   :  { %1809 = vmatpush3.msra.mxu0 %v1471_v55 }
 0x709   :  { %1810 = vmatprep.subr.mxu0 %v2406_v32 }
 0x70a   :  { %1811 = vmatpush3.msra.mxu0 %v1470_v36 }
 0x70b   :  { %1812 = vmatprep.subr.mxu0 %v2406_v32 }
 0x70c   :  { %1813 = vmatpush3.msra.mxu0 %v1469_v37 }
 0x70d   :  { %1814 = vmatprep.subr.mxu0 %v2406_v32 }
 0x70e   :  { %1815 = vmatpush3.msra.mxu0 %v1468_v38 }
 0x70f   :  { %1816 = vmatprep.subr.mxu0 %v2406_v32 }
 0x710   :  { %1817 = vmatpush3.msra.mxu0 %v1467_v39 }
 0x711   :  { %1818 = vmatprep.subr.mxu0 %v2406_v32 }
 0x712   :  { %1819 = vmatpush3.msra.mxu0 %v1466_v40 }
 0x713   :  { %1820 = vmatprep.subr.mxu0 %v2406_v32 }
 0x714   :  { %1821 = vmatpush3.msra.mxu0 %v1465_v41 }
 0x715   :  { %1822 = vmatprep.subr.mxu0 %v2406_v32 }
 0x716   :  { %1823 = vmatpush3.msra.mxu0 %v1464_v42 }
 0x717   :  { %1824 = vmatprep.subr.mxu0 %v2406_v32 }
 0x718   :  { %1825 = vmatpush3.msra.mxu0 %v1463_v43 }
 0x719   :  { %1826 = vmatprep.subr.mxu0 %v2406_v32 }
 0x71a   :  { %1827 = vmatpush3.msra.mxu0 %v1462_v44 }
 0x71b   :  { %1828 = vmatprep.subr.mxu0 %v2406_v32 }
 0x71c   :  { %1829 = vmatpush3.msra.mxu0 %v1461_v45 }
 0x71d   :  { %1830 = vmatprep.subr.mxu0 %v2406_v32 }
 0x71e   :  { %1831 = vmatpush3.msra.mxu0 %v1460_v46 }
 0x71f   :  { %1832 = vmatprep.subr.mxu0 %v2406_v32 }
 0x720   :  { %1833 = vmatpush3.msra.mxu0 %v1459_v47 }
 0x721   :  { %1834 = vmatprep.subr.mxu0 %v2406_v32 }
 0x722   :  { %1835 = vmatpush3.msra.mxu0 %v1458_v48 }
 0x723   :  { %1836 = vmatprep.subr.mxu0 %v2406_v32 }
 0x724   :  { %1837 = vmatpush3.msra.mxu0 %v1457_v49 }
 0x7c5   :  { %v1453_v50 = vpop.f32.mrf.mxu0 }
 0x7c6   :  { %1839 = vmatmul.mubr.f32.vlgmr.msra.gmra.mxu0 %v1453_v50 }
 0x7c7   :  { %v1805_v51 = vpop.f32.mrf.mxu0 }
 0x886   :  { %v1546_v53 = vpop.f32.mrf.mxu0 }
 0x887   :  { %v1547_v56 = vadd.f32 %v1602_v52, %v1546_v53 }
 0x888   :  { %v1840_v57 = vpop.f32.mrf.mxu0 }
 0x889   :  { %1551 = vst.msk [vmem:[#allocation6] sm:$0x3] %vm1550_vm15, %v1547_v56 }
 0x88a   :  { %1879 = shalt.err (!%p1876_p4)
}
 0x88b   :  { %1561 = dma.vmem_to_hbm [thread:$0]  %s1559_s3, 32, %s2758_s15, [#allocation7]  }
 0x88c   :  { %1888 = dma.done.wait [#allocation7], 32  }
 0x88d   :  { %1889 = vsyncadd [#allocation7], 4294967264 }
 0x88e   :  { %1565 = vsyncpa [#allocation7], 1 }

</bundles_post_ra>
